<compile_context>
chip_gen: v5e
topology: v5e:2x2
jax: 0.10.0
libtpu: 0.0.40
codegen_flags: <defaults>
</compile_context>

<pallas_src>
import math

import jax
import jax.numpy as jnp
from jax.experimental import pallas as pl
from jax.experimental.pallas import tpu as pltpu

n_embd = 256       # C (fixed by the module)
block_size = 128   # maximum sequence length the causal mask supports


def head_kernel(x_ref, w_ref, mask_ref, o_ref):
    Bb, T, C = x_ref.shape
    H = w_ref.shape[1] // 3

    # Fused QKV projection: (Bb*T, C) @ (C, 3H); bf16 operands, f32 accumulate.
    x2d = x_ref[...].reshape(Bb * T, C).astype(jnp.bfloat16)
    qkv = jnp.dot(x2d, w_ref[...], preferred_element_type=jnp.float32)  # (Bb*T, 3H)

    k = qkv[:, 0 * H:1 * H].reshape(Bb, T, H)
    q = qkv[:, 1 * H:2 * H].reshape(Bb, T, H)   # C**-0.5 already folded into weight
    v = qkv[:, 2 * H:3 * H].reshape(Bb, T, H)

    # Scores: batched q @ k^T, contracting last dims directly (no transpose op).
    s = jnp.einsum("bqh,bkh->bqk",
                   q.astype(jnp.bfloat16), k.astype(jnp.bfloat16),
                   preferred_element_type=jnp.float32)            # (Bb, T, T) f32

    # Additive causal mask (0 on/below diagonal, -inf above), precomputed once.
    s = s + mask_ref[...][None, :, :]

    # Numerically stable softmax in f32; approx reciprocal runs on the EUP.
    s = s - jnp.max(s, axis=-1, keepdims=True)
    p = jnp.exp(s)
    p = p * pl.reciprocal(jnp.sum(p, axis=-1, keepdims=True), approx=True)

    out = jnp.einsum("bqk,bkh->bqh",
                     p.astype(jnp.bfloat16), v.astype(jnp.bfloat16),
                     preferred_element_type=jnp.float32)          # (Bb, T, H)
    o_ref[...] = out.astype(o_ref.dtype)


def _pick_batch_block(B, max_bb=4):
    """Largest divisor of B <= max_bb, preferring to keep >= 2 grid steps."""
    bb = min(max_bb, B)
    while B % bb:
        bb -= 1
    while bb > 1 and B // bb < 2:
        nb = bb - 1
        while nb > 1 and B % nb:
            nb -= 1
        bb = nb
    return bb


def head_forward(x, wk, wq, wv):
    """x: (B, T, C) float32; wk/wq/wv: (C, H). Returns (B, T, H) float32."""
    B, T, C = x.shape
    H = wk.shape[1]
    assert T <= block_size and C == n_embd

    # Fold C**-0.5 into the query projection and pack QKV into one bf16 (C, 3H)
    # weight (cast once here, not per grid step).
    scale = float(C) ** -0.5
    w_packed = jnp.concatenate([wk, wq * scale, wv], axis=1).astype(jnp.bfloat16)

    # Additive causal-mask bias, built once outside the kernel.
    row = jax.lax.broadcasted_iota(jnp.int32, (T, T), 0)
    col = jax.lax.broadcasted_iota(jnp.int32, (T, T), 1)
    mask_bias = jnp.where(row >= col, 0.0, -jnp.inf).astype(jnp.float32)

    Bb = _pick_batch_block(B)
    grid = (B // Bb,)

    cost = pl.CostEstimate(
        flops=2 * B * T * C * 3 * H + 2 * (2 * B * T * T * H),
        transcendentals=B * T * T,
        bytes_accessed=(x.size * x.dtype.itemsize
                        + w_packed.size * 2
                        + T * T * 4
                        + B * T * H * 4),
    )

    return pl.pallas_call(
        head_kernel,
        out_shape=jax.ShapeDtypeStruct((B, T, H), x.dtype),
        grid_spec=pltpu.PrefetchScalarGridSpec(
            num_scalar_prefetch=0,
            grid=grid,
            in_specs=[
                pl.BlockSpec((Bb, T, C), lambda b: (b, 0, 0)),
                pl.BlockSpec((C, 3 * H), lambda b: (0, 0)),   # resident weights
                pl.BlockSpec((T, T), lambda b: (0, 0)),       # resident mask
            ],
            out_specs=pl.BlockSpec((Bb, T, H), lambda b: (b, 0, 0)),
        ),
        compiler_params=pltpu.CompilerParams(
            dimension_semantics=("parallel",)),
        cost_estimate=cost,
    )(x, w_packed, mask_bias)


def head_reference(x, wk, wq, wv):
    """Plain-JAX f32 reference mirroring the PyTorch forward."""
    B, T, C = x.shape
    k = x @ wk
    q = x @ wq
    v = x @ wv
    wei = jnp.einsum("btd,bsd->bts", q, k) * (C ** -0.5)
    mask = jnp.tril(jnp.ones((T, T), dtype=bool))
    wei = jnp.where(mask[None], wei, -jnp.inf)
    wei = jax.nn.softmax(wei, axis=-1)
    return wei @ v


if __name__ == "__main__":
    B, T, C = 4, block_size, n_embd
    head_size = 32

    key = jax.random.PRNGKey(0)
    kx, kk, kq, kv = jax.random.split(key, 4)

    x = jax.random.normal(kx, (B, T, C), dtype=jnp.float32)
    # Deterministic init matching nn.Linear default: U(-1/sqrt(C), 1/sqrt(C)).
    bound = 1.0 / math.sqrt(C)
    wk = jax.random.uniform(kk, (C, head_size), jnp.float32, -bound, bound)
    wq = jax.random.uniform(kq, (C, head_size), jnp.float32, -bound, bound)
    wv = jax.random.uniform(kv, (C, head_size), jnp.float32, -bound, bound)

    out = jax.block_until_ready(head_forward(x, wk, wq, wv))

    ref = head_reference(x, wk, wq, wv)
    assert out.shape == (B, T, head_size)
    # bf16 matmul operands + approx reciprocal => small drift vs the f32 reference.
    assert jnp.allclose(out, ref, atol=2e-2, rtol=2e-2), "mismatch vs reference"

    print("KERNEL_OK")
</pallas_src>

<mosaic_0001>
module attributes {stable_mosaic.version = 11 : i64} {
  func.func @head_kernel(%arg0: i32, %arg1: memref<2x128x256xf32, #tpu.memory_space<vmem>>, %arg2: memref<256x96xbf16, #tpu.memory_space<vmem>>, %arg3: memref<128x128xf32, #tpu.memory_space<vmem>>, %arg4: memref<2x128x32xf32, #tpu.memory_space<vmem>>) attributes {dimension_semantics = [#tpu.dimension_semantics<parallel>], iteration_bounds = array<i64: 2>, scalar_prefetch = 0 : i64, scratch_operands = 0 : i64, tpu.core_type = #tpu.core_type<tc>, window_params = [{transform_indices = @transform_0, window_bounds = array<i64: 2, 128, 256>}, {pipeline_mode = #tpu.pipeline_mode<synchronous>, transform_indices = @transform_1, window_bounds = array<i64: 256, 96>}, {pipeline_mode = #tpu.pipeline_mode<synchronous>, transform_indices = @transform_2, window_bounds = array<i64: 128, 128>}, {transform_indices = @transform_3, window_bounds = array<i64: 2, 128, 32>}]} {
    %c0 = arith.constant 0 : index
    %c0_0 = arith.constant 0 : index
    %c0_1 = arith.constant 0 : index
    %0 = vector.load %arg1[%c0, %c0_0, %c0_1] : memref<2x128x256xf32, #tpu.memory_space<vmem>>, vector<2x128x256xf32>
    %1 = vector.shape_cast %0 : vector<2x128x256xf32> to vector<256x256xf32>
    %2 = arith.truncf %1 : vector<256x256xf32> to vector<256x256xbf16>
    %c0_2 = arith.constant 0 : index
    %c0_3 = arith.constant 0 : index
    %3 = vector.load %arg2[%c0_2, %c0_3] : memref<256x96xbf16, #tpu.memory_space<vmem>>, vector<256x96xbf16>
    %cst = arith.constant dense<0.000000e+00> : vector<256x96xf32>
    %4 = tpu.matmul %2, %3, %cst {dimension_numbers = #tpu.dot_dimension_numbers<[1], [0], [0], [1], [0, 0, 1, 1], [], []>} : vector<256x256xbf16>, vector<256x96xbf16>, vector<256x96xf32> -> vector<256x96xf32>
    %5 = vector.extract_strided_slice %4 {offsets = [0, 0], sizes = [256, 32], strides = [1, 1]} : vector<256x96xf32> to vector<256x32xf32>
    %6 = vector.shape_cast %5 : vector<256x32xf32> to vector<2x128x32xf32>
    %7 = vector.extract_strided_slice %4 {offsets = [0, 32], sizes = [256, 32], strides = [1, 1]} : vector<256x96xf32> to vector<256x32xf32>
    %8 = vector.shape_cast %7 : vector<256x32xf32> to vector<2x128x32xf32>
    %9 = vector.extract_strided_slice %4 {offsets = [0, 64], sizes = [256, 32], strides = [1, 1]} : vector<256x96xf32> to vector<256x32xf32>
    %10 = vector.shape_cast %9 : vector<256x32xf32> to vector<2x128x32xf32>
    %11 = arith.truncf %8 : vector<2x128x32xf32> to vector<2x128x32xbf16>
    %12 = arith.truncf %6 : vector<2x128x32xf32> to vector<2x128x32xbf16>
    "tpu.trace_start"() <{level = 10 : i32, message = "bqh,bkh->bqk"}> : () -> ()
    %cst_4 = arith.constant dense<0.000000e+00> : vector<2x128x128xf32>
    %13 = tpu.matmul %11, %12, %cst_4 {dimension_numbers = #tpu.dot_dimension_numbers<[2], [2], [1], [1], [0, 0, 0, 1, 1, 1], [0], [0]>} : vector<2x128x32xbf16>, vector<2x128x32xbf16>, vector<2x128x128xf32> -> vector<2x128x128xf32>
    "tpu.trace_stop"() : () -> ()
    %c0_5 = arith.constant 0 : index
    %c0_6 = arith.constant 0 : index
    %14 = vector.load %arg3[%c0_5, %c0_6] : memref<128x128xf32, #tpu.memory_space<vmem>>, vector<128x128xf32>
    %15 = vector.shape_cast %14 : vector<128x128xf32> to vector<1x128x128xf32>
    %16 = vector.broadcast %15 : vector<1x128x128xf32> to vector<2x128x128xf32>
    %17 = arith.addf %13, %16 : vector<2x128x128xf32>
    %cst_7 = arith.constant dense<0xFF800000> : vector<2x128xf32>
    %18 = vector.multi_reduction <maximumf>, %17, %cst_7 [2] : vector<2x128x128xf32> to vector<2x128xf32>
    %19 = vector.shape_cast %18 : vector<2x128xf32> to vector<2x128x1xf32>
    %20 = vector.broadcast %19 : vector<2x128x1xf32> to vector<2x128x128xf32>
    %21 = arith.subf %17, %20 : vector<2x128x128xf32>
    %22 = math.exp %21 : vector<2x128x128xf32>
    %cst_8 = arith.constant dense<0.000000e+00> : vector<2x128xf32>
    %23 = vector.multi_reduction <add>, %22, %cst_8 [2] : vector<2x128x128xf32> to vector<2x128xf32>
    %24 = vector.shape_cast %23 : vector<2x128xf32> to vector<2x128x1xf32>
    %25 = tpu.reciprocal %24 {approx = true} : vector<2x128x1xf32> -> vector<2x128x1xf32>
    %26 = vector.broadcast %25 : vector<2x128x1xf32> to vector<2x128x128xf32>
    %27 = arith.mulf %22, %26 : vector<2x128x128xf32>
    %28 = arith.truncf %27 : vector<2x128x128xf32> to vector<2x128x128xbf16>
    %29 = arith.truncf %10 : vector<2x128x32xf32> to vector<2x128x32xbf16>
    "tpu.trace_start"() <{level = 10 : i32, message = "bqk,bkh->bqh"}> : () -> ()
    %cst_9 = arith.constant dense<0.000000e+00> : vector<2x128x32xf32>
    %30 = tpu.matmul %28, %29, %cst_9 {dimension_numbers = #tpu.dot_dimension_numbers<[2], [1], [1], [2], [0, 0, 0, 1, 1, 2], [0], [0]>} : vector<2x128x128xbf16>, vector<2x128x32xbf16>, vector<2x128x32xf32> -> vector<2x128x32xf32>
    "tpu.trace_stop"() : () -> ()
    %c0_10 = arith.constant 0 : index
    %c0_11 = arith.constant 0 : index
    %c0_12 = arith.constant 0 : index
    %31 = vector.load %arg4[%c0_10, %c0_11, %c0_12] : memref<2x128x32xf32, #tpu.memory_space<vmem>>, vector<2x128x32xf32>
    tpu.vector_store %arg4[%c0_10, %c0_11, %c0_12], %30 {strides = array<i32>} : memref<2x128x32xf32, #tpu.memory_space<vmem>>, vector<2x128x32xf32>,
    return
  }
  func.func @transform_0(%arg0: i32) -> (i32, i32, i32) {
    %c0_i32 = arith.constant 0 : i32
    %c0_i32_0 = arith.constant 0 : i32
    %c0_i32_1 = arith.constant 0 : i32
    return %arg0, %c0_i32, %c0_i32_0 : i32, i32, i32
  }
  func.func @transform_1(%arg0: i32) -> (i32, i32) {
    %c0_i32 = arith.constant 0 : i32
    %c0_i32_0 = arith.constant 0 : i32
    %c0_i32_1 = arith.constant 0 : i32
    return %c0_i32, %c0_i32_0 : i32, i32
  }
  func.func @transform_2(%arg0: i32) -> (i32, i32) {
    %c0_i32 = arith.constant 0 : i32
    %c0_i32_0 = arith.constant 0 : i32
    %c0_i32_1 = arith.constant 0 : i32
    return %c0_i32, %c0_i32_0 : i32, i32
  }
  func.func @transform_3(%arg0: i32) -> (i32, i32, i32) {
    %c0_i32 = arith.constant 0 : i32
    %c0_i32_0 = arith.constant 0 : i32
    %c0_i32_1 = arith.constant 0 : i32
    return %arg0, %c0_i32, %c0_i32_0 : i32, i32, i32
  }
}

</mosaic_0001>

<bundles_post_ra>
// kernel: tpu_custom_call.1
= control target key start
LH: loop header
LB: loop body
LE: loop exit
PB: predicated region body
PF: predicated region fallthrough
CT: control target
= control target key end

     0   :  { %8 = vsyncpa [#allocation3], 0  ;;  %s2772_s0 = inlined_call_operand.hbm [shape: f32[4,128,256], index: 0, kind: input, shape index: {}]   ;;  %s2773_s1 = inlined_call_operand.vmem [shape: bf16[256,96], index: 1, kind: input, shape index: {}]   ;;  %s2774_s2 = inlined_call_operand.vmem [shape: f32[128,128], index: 2, kind: input, shape index: {}]   ;;  %s2775_s3 = inlined_call_operand.vmem [shape: f32[4,128,32], index: 3, kind: output, shape index: {}]  }
   0x1   :  { %10 = vsyncpa [#allocation3 + $0x1], 0  ;;  %s2009_s12 = smov 0   ;;  %s2011_s13 = smov 0  }
   0x2   :  { %s2013_s14 = smov 0   ;;  %s2015_s15 = smov 0  }
   0x3 LB: > { %s1618_s16 = sadd.s32 4294967295, %s1983_s15   ;;  %s2029_s17 = sadd.s32 1, %s1983_s15   ;;  %s1983_s15 = sphi %s2015_s15, %s2782_s15   ;;  %s1979_s14 = sphi %s2013_s14, %s2781_s14   ;;  %s1975_s13 = sphi %s2011_s13, %s2780_s13   ;;  %s1971_s12 = sphi %s2009_s12, %s2779_s12  }
   0x4   : > { %s20_s18 = ssub.s32 %s1983_s15, %s2029_s17  ;;  %s23_s19 = sadd.s32 1, %s1979_s14 }
   0x5   : > { %p21_p0 = scmp.eq.s32.totalorder %s20_s18, 0  ;;  %p30_p1 = scmp.ne.s32.totalorder %s1979_s14, %s1975_s13 }
   0x6   : > { %p31_p2 = scmp.eq.s32.totalorder %s1983_s15, 0  ;;  %p36_p3 = scmp.ne.s32.totalorder %s1975_s13, %s1971_s12 }
   0x7   : > { %s2039_s20 = scalar_select %p21_p0, %s1979_s14, %s23_s19  }
   0x8   : > { %p2041_p4 = por %p31_p2, %p30_p1  ;;  %p37_p5 = scmp.eq.s32.totalorder %s1618_s16, 0 }
   0x9   : > { %p1754_p6 = scmp.lt.s32.totalorder %s1983_s15, 2  ;;  %s134_s23 = sand.u32 1, %s1979_s14  }
   0xa   : > { %p2048_p7 = por %p37_p5, %p36_p3  ;;  %s1622_s24 = sshll.u32 %s134_s23, 9 }
   0xb   : > { %s1714_s25 = sshll.u32 %s1983_s15, 9  ;;  %s138_s29 = scalar_lea.vmem [#allocation2], %s1622_s24 }
   0xc   : > { %s144_s28 = scalar_lea.hbm %s2772_s0, %s1714_s25  ;;  %s147_s30 = sshll.u32 %s138_s29, 4  ;;  %s148_s30 = int_to_ptr.vmem [resolvable:$true] %s147_s30 }
   0xd   : > { %s145_s4 = sshll.u32 %s144_s28, 4  ;;  %p2059_p8 = pnand %p1754_p6, %p2041_p4  ;;  %s146_s4 = int_to_ptr.hbm [resolvable:$true] %s145_s4 }
   0xe   : > { %p1626_p9 = scmp.ge.s32.totalorder %s1983_s15, 1  ;;  %s135_s6 = scalar_lea.sflag [#allocation3], %s134_s23 }
   0xf   : > { %s1919_s7 = sshra.s32 %s146_s4, 4  ;;  %p1923_p11 = pneg %p2059_p8  ;;  %s1920_s7 = int_to_ptr.hbm [resolvable:$true] %s1919_s7 }
  0x10   : > { %s1921_s8 = scalar_lea.hbm %s1920_s7, 512  ;;  %s1926_s11 = scalar_lea.hbm %s2772_s0, 1024 }
  0x11   : > { %p1922_p10 = scmp.ne.s32.totalorder %s1920_s7, %s1921_s8  ;;  %p1927_p0 = scmp.lt.s32.totalorder %s1920_s7, %s2772_s0 }
  0x12   : > { %p1928_p1 = scmp.lt.s32.totalorder %s1926_s11, %s1921_s8 }
  0x13   : > { %p1924_p12 = pnand %p1923_p11, %p1922_p10 }
  0x14   : > { %p1929_p2 = por %p1928_p1, %p1927_p0 }
  0x15   : > { %p1925_p13 = pneg %p1924_p12 }
  0x17   : > { %p1930_p3 = pnand %p1929_p2, %p1925_p13 }
  0x19   : > { %1933 = shalt.err (!%p1930_p3)
}
  0x1a   : > { %s1985_s19 = smov 256   ;;  %s1986_s21 = smov 16  }
  0x1b   : > { %1753 = dma.hbm_to_vmem [thread:$0]  (!%p2059_p8), %s146_s4, 8192, %s148_s30, %s135_s6, %s1985_s19, %s1985_s19, %s1986_s21  }
  0x1c   : > { %p155_p4 = scmp.lt.s32.totalorder %s1983_s15, 3 }
  0x1e   : > { %p156_p5 = pnand %p1626_p9, %p155_p4 }
  0x1f   : > { %s161_s23 = sand.u32 (!%p156_p5), 1, %s1975_s13  }
  0x20   : > { %159 = sbr.rel (%p156_p5) target bundleno = 1229 (0x4cd), region = 32  ;;  %s1627_s24 = sshll.u32 (!%p156_p5), %s161_s23, 9 }
  0x21   : > { %s162_s25 = scalar_lea.sflag (!%p156_p5), [#allocation3], %s161_s23  ;;  %s2078_s26 = scalar_lea.vmem (!%p156_p5), [#allocation2], %s1627_s24 }
  0x25   : > { %1966 = dma.done.wait (%p2048_p7), %s162_s25, 8192  }
  0x26   : > { %1968 = vsyncadd (%p2048_p7), %s162_s25, 4294959104  ;;  %v1723_v0 = vld [vmem:[%s2773_s1 + $0x38] sm:$0xff]  ;;  %v1722_v2 = vld [vmem:[%s2773_s1 + $0x30] sm:$0xff]  ;;  %s1987_s11 = smov 96   ;;  %vm704_vm0 = vcmask 261120   ;;  %s1628_s4 = sshll.u32 %s1618_s16, 1 }
  0x27   : > { %v1731_v1 = vld [vmem:[%s2773_s1 + $0x78] sm:$0xff]  ;;  %422 = vmatpush.bf16.msra.mxu0 %v1723_v0  ;;  %v1730_v3 = vld [vmem:[%s2773_s1 + $0x70] sm:$0xff]  ;;  %v1721_v4 = vld [vmem:[%s2773_s1 + $0x28] sm:$0xff]  ;;  %p192_p6 = scmp.lt.s32.totalorder %s1628_s4, 3 }
  0x28   : > { %511 = vmatpush.bf16.msra.mxu1 %v1731_v1  ;;  %v1729_v5 = vld [vmem:[%s2773_s1 + $0x68] sm:$0xff]  ;;  %v1720_v6 = vld [vmem:[%s2773_s1 + $0x20] sm:$0xff]  ;;  %v1719_v8 = vld [vmem:[%s2773_s1 + $0x18] sm:$0xff] }
  0x29   : > { %v1728_v7 = vld [vmem:[%s2773_s1 + $0x60] sm:$0xff]  ;;  %v1727_v9 = vld [vmem:[%s2773_s1 + $0x58] sm:$0xff]  ;;  %v1718_v10 = vld [vmem:[%s2773_s1 + $0x10] sm:$0xff]  ;;  %s2784_s4 = smov (!%p192_p6, %s1628_s4), 3 }
  0x2a   : > { %v1726_v11 = vld [vmem:[%s2773_s1 + $0x50] sm:$0xff]  ;;  %v1717_v12 = vld [vmem:[%s2773_s1 + $0x8] sm:$0xff]  ;;  %v1716_v14 = vld [vmem:[%s2773_s1] sm:$0xff]  ;;  %s1715_s15 = sshll.u32 %s2784_s4, 7 }
  0x2b   : > { %423 = vmatpush.bf16.msra.mxu0 %v1722_v2  ;;  %v1725_v13 = vld [vmem:[%s2773_s1 + $0x48] sm:$0xff]  ;;  %v1724_v15 = vld [vmem:[%s2773_s1 + $0x40] sm:$0xff]  ;;  %v200_v17 = vld [vmem:[%s2078_s26 + $0x10] sm:$0xff]  ;;  %s2643_s6 = scalar_lea.vmem %s2775_s3, %s1715_s15 }
  0x2c   : > { %512 = vmatpush.bf16.msra.mxu1 %v1730_v3  ;;  %v198_v16 = vld [vmem:[%s2078_s26] sm:$0xff]  ;;  %v199_v18 = vld [vmem:[%s2078_s26 + $0x8] sm:$0xff]  ;;  %v201_v19 = vld [vmem:[%s2078_s26 + $0x18] sm:$0xff] }
  0x2d   : > { %v262_v20 = vpack.c.bf16 %v200_v17, %v198_v16  ;;  %v263_v21 = vpack.c.bf16 %v201_v19, %v199_v18  ;;  %v202_v22 = vld [vmem:[%s2078_s26 + $0x20] sm:$0xff]  ;;  %v204_v23 = vld [vmem:[%s2078_s26 + $0x30] sm:$0xff]  ;;  %v203_v24 = vld [vmem:[%s2078_s26 + $0x28] sm:$0xff] }
  0x2e   : > { %v205_v25 = vld [vmem:[%s2078_s26 + $0x38] sm:$0xff]  ;;  %v264_v26 = vpack.c.bf16 %v204_v23, %v202_v22  ;;  %v206_v28 = vld [vmem:[%s2078_s26 + $0x40] sm:$0xff]  ;;  %v208_v29 = vld [vmem:[%s2078_s26 + $0x50] sm:$0xff] }
  0x2f   : > { %424 = vmatpush.bf16.msra.mxu0 %v1721_v4  ;;  %v265_v27 = vpack.c.bf16 %v205_v25, %v203_v24  ;;  %v207_v30 = vld [vmem:[%s2078_s26 + $0x48] sm:$0xff]  ;;  %v209_v31 = vld [vmem:[%s2078_s26 + $0x58] sm:$0xff]  ;;  %v266_v32 = vpack.c.bf16 %v208_v29, %v206_v28  ;;  %v210_v34 = vld [vmem:[%s2078_s26 + $0x60] sm:$0xff] }
  0x30   : > { %513 = vmatpush.bf16.msra.mxu1 %v1729_v5  ;;  %v267_v33 = vpack.c.bf16 %v209_v31, %v207_v30  ;;  %v212_v35 = vld [vmem:[%s2078_s26 + $0x70] sm:$0xff]  ;;  %v211_v36 = vld [vmem:[%s2078_s26 + $0x68] sm:$0xff]  ;;  %v213_v37 = vld [vmem:[%s2078_s26 + $0x78] sm:$0xff] }
  0x31   : > { %v268_v38 = vpack.c.bf16 %v212_v35, %v210_v34  ;;  %v269_v39 = vpack.c.bf16 %v213_v37, %v211_v36  ;;  %v214_v40 = vld [vmem:[%s2078_s26 + $0x80] sm:$0xff]  ;;  %v216_v41 = vld [vmem:[%s2078_s26 + $0x90] sm:$0xff]  ;;  %v215_v42 = vld [vmem:[%s2078_s26 + $0x88] sm:$0xff] }
  0x32   : > { %v217_v43 = vld [vmem:[%s2078_s26 + $0x98] sm:$0xff]  ;;  %v270_v44 = vpack.c.bf16 %v216_v41, %v214_v40  ;;  %v218_v46 = vld [vmem:[%s2078_s26 + $0xa0] sm:$0xff]  ;;  %v220_v47 = vld [vmem:[%s2078_s26 + $0xb0] sm:$0xff] }
  0x33   : > { %425 = vmatpush.bf16.msra.mxu0 %v1720_v6  ;;  %v271_v45 = vpack.c.bf16 %v217_v43, %v215_v42  ;;  %v219_v48 = vld [vmem:[%s2078_s26 + $0xa8] sm:$0xff]  ;;  %v221_v49 = vld [vmem:[%s2078_s26 + $0xb8] sm:$0xff]  ;;  %v272_v50 = vpack.c.bf16 %v220_v47, %v218_v46  ;;  %v222_v52 = vld [vmem:[%s2078_s26 + $0xc0] sm:$0xff] }
  0x34   : > { %514 = vmatpush.bf16.msra.mxu1 %v1728_v7  ;;  %v273_v51 = vpack.c.bf16 %v221_v49, %v219_v48  ;;  %v224_v53 = vld [vmem:[%s2078_s26 + $0xd0] sm:$0xff]  ;;  %v223_v54 = vld [vmem:[%s2078_s26 + $0xc8] sm:$0xff]  ;;  %v225_v55 = vld [vmem:[%s2078_s26 + $0xd8] sm:$0xff] }
  0x35   : > { %v274_v56 = vpack.c.bf16 %v224_v53, %v222_v52  ;;  %v275_v57 = vpack.c.bf16 %v225_v55, %v223_v54  ;;  %v226_v58 = vld [vmem:[%s2078_s26 + $0xe0] sm:$0xff]  ;;  %v228_v59 = vld [vmem:[%s2078_s26 + $0xf0] sm:$0xff]  ;;  %v227_v60 = vld [vmem:[%s2078_s26 + $0xe8] sm:$0xff] }
  0x36   : > { %v229_v61 = vld [vmem:[%s2078_s26 + $0xf8] sm:$0xff]  ;;  %v276_v62 = vpack.c.bf16 %v228_v59, %v226_v58  ;;  %v230_v0 = vld [vmem:[%s2078_s26 + $0x100] sm:$0xff]  ;;  %v232_v1 = vld [vmem:[%s2078_s26 + $0x110] sm:$0xff] }
  0x37   : > { %426 = vmatpush.bf16.msra.mxu0 %v1719_v8  ;;  %v277_v63 = vpack.c.bf16 %v229_v61, %v227_v60  ;;  %v231_v2 = vld [vmem:[%s2078_s26 + $0x108] sm:$0xff]  ;;  %v233_v3 = vld [vmem:[%s2078_s26 + $0x118] sm:$0xff]  ;;  %v278_v4 = vpack.c.bf16 %v232_v1, %v230_v0  ;;  %v238_v31 = vld [vmem:[%s2078_s26 + $0x140] sm:$0xff] }
  0x38   : > { %515 = vmatpush.bf16.msra.mxu1 %v1727_v9  ;;  %v279_v5 = vpack.c.bf16 %v233_v3, %v231_v2  ;;  %v235_v16 = vld [vmem:[%s2078_s26 + $0x128] sm:$0xff]  ;;  %v237_v17 = vld [vmem:[%s2078_s26 + $0x138] sm:$0xff]  ;;  %v242_v48 = vld [vmem:[%s2078_s26 + $0x160] sm:$0xff] }
  0x39   : > { %v281_v22 = vpack.c.bf16 %v237_v17, %v235_v16  ;;  %v241_v34 = vld [vmem:[%s2078_s26 + $0x158] sm:$0xff]  ;;  %v244_v49 = vld [vmem:[%s2078_s26 + $0x170] sm:$0xff]  ;;  %v246_v1 = vld [vmem:[%s2078_s26 + $0x180] sm:$0xff] }
  0x3a   : > { %v284_v55 = vpack.c.bf16 %v244_v49, %v242_v48  ;;  %v248_v2 = vld [vmem:[%s2078_s26 + $0x190] sm:$0xff]  ;;  %v247_v3 = vld [vmem:[%s2078_s26 + $0x188] sm:$0xff] }
  0x3b   : > { %427 = vmatpush.bf16.msra.mxu0 %v1718_v10  ;;  %v252_v16 = vld [vmem:[%s2078_s26 + $0x1b0] sm:$0xff]  ;;  %v251_v17 = vld [vmem:[%s2078_s26 + $0x1a8] sm:$0xff] }
  0x3c   : > { %516 = vmatpush.bf16.msra.mxu1 %v1726_v11 }
  0x3f   : > { %428 = vmatpush.bf16.msra.mxu0 %v1717_v12 }
  0x40   : > { %517 = vmatpush.bf16.msra.mxu1 %v1725_v13 }
  0x43   : > { %429 = vmatpush.bf16.msra.mxu0 %v1716_v14  ;;  %v234_v14 = vld [vmem:[%s2078_s26 + $0x120] sm:$0xff] }
  0x44   : > { %518 = vmatpush.bf16.msra.mxu1 %v1724_v15  ;;  %v236_v15 = vld [vmem:[%s2078_s26 + $0x130] sm:$0xff] }
  0x46   : > { %430 = vmatmul.bf16.vlgmr.msra.gmra.mxu0 %v262_v20 }
  0x47   : > { %519 = vmatmul.bf16.vlgmr.msra.gmra.mxu1 %v263_v21  ;;  %v280_v21 = vpack.c.bf16 %v236_v15, %v234_v14  ;;  %v250_v15 = vld [vmem:[%s2078_s26 + $0x1a0] sm:$0xff] }
  0x56   : > { %435 = vmatmul.bf16.gmra.mxu0 %v264_v26 }
  0x57   : > { %524 = vmatmul.bf16.gmra.mxu1 %v265_v27 }
  0x66   : > { %440 = vmatmul.bf16.gmra.mxu0 %v266_v32  ;;  %v240_v32 = vld [vmem:[%s2078_s26 + $0x150] sm:$0xff] }
  0x67   : > { %529 = vmatmul.bf16.gmra.mxu1 %v267_v33  ;;  %v239_v33 = vld [vmem:[%s2078_s26 + $0x148] sm:$0xff] }
  0x76   : > { %445 = vmatmul.bf16.gmra.mxu0 %v268_v38  ;;  %v282_v38 = vpack.c.bf16 %v240_v32, %v238_v31 }
  0x77   : > { %534 = vmatmul.bf16.gmra.mxu1 %v269_v39  ;;  %v283_v39 = vpack.c.bf16 %v241_v34, %v239_v33 }
  0x86   : > { %450 = vmatmul.bf16.gmra.mxu0 %v270_v44 }
  0x87   : > { %539 = vmatmul.bf16.gmra.mxu1 %v271_v45 }
  0x96   : > { %455 = vmatmul.bf16.gmra.mxu0 %v272_v50  ;;  %v243_v50 = vld [vmem:[%s2078_s26 + $0x168] sm:$0xff] }
  0x97   : > { %544 = vmatmul.bf16.gmra.mxu1 %v273_v51  ;;  %v245_v51 = vld [vmem:[%s2078_s26 + $0x178] sm:$0xff] }
  0xa6   : > { %460 = vmatmul.bf16.gmra.mxu0 %v274_v56  ;;  %v285_v56 = vpack.c.bf16 %v245_v51, %v243_v50 }
  0xa7   : > { %549 = vmatmul.bf16.gmra.mxu1 %v275_v57 }
  0xb6   : > { %465 = vmatmul.bf16.gmra.mxu0 %v276_v62 }
  0xb7   : > { %554 = vmatmul.bf16.gmra.mxu1 %v277_v63 }
  0xc3   : > { %v431_v6 = vpop.f32.mrf.mxu0 }
  0xc4   : > { %v520_v7 = vpop.f32.mrf.mxu1 }
  0xc5   : > { %v521_v8 = vadd.f32 %v520_v7, %v431_v6  ;;  %v286_v7 = vpack.c.bf16 %v248_v2, %v246_v1 }
  0xc6   : > { %470 = vmatmul.bf16.gmra.mxu0 %v278_v4  ;;  %v249_v4 = vld [vmem:[%s2078_s26 + $0x198] sm:$0xff] }
  0xc7   : > { %559 = vmatmul.bf16.gmra.mxu1 %v279_v5  ;;  %v600_v11 = vpack.c.bf16 %v521_v8, %v521_v8  ;;  %v287_v8 = vpack.c.bf16 %v249_v4, %v247_v3 }
  0xc9   : > { %v664_v18 = vunpack.c.l.b16 %v600_v11 }
  0xcb   : > { %v433_v9 = vpop.f32.mrf.mxu0 }
  0xcc   : > { %v522_v10 = vpop.f32.mrf.mxu1 }
  0xcd   : > { %v523_v12 = vadd.f32 %v522_v10, %v433_v9 }
  0xcf   : > { %v601_v13 = vpack.c.bf16 %v523_v12, %v523_v12 }
  0xd1   : > { %v665_v19 = vunpack.c.l.b16 %v601_v13 }
  0xd3   : > { %v2172_v20 = vpack.c.b16 %v665_v19, %v664_v18  ;;  %v436_v23 = vpop.f32.mrf.mxu0  ;;  %v253_v18 = vld [vmem:[%s2078_s26 + $0x1b8] sm:$0xff]  ;;  %v288_v19 = vpack.c.bf16 %v252_v16, %v250_v15 }
  0xd4   : > { %v525_v24 = vpop.f32.mrf.mxu1 }
  0xd5   : > { %688 = vrot.lane.b32.xlu0 %v2172_v20, %s1987_s11  ;;  %v526_v25 = vadd.f32 %v525_v24, %v436_v23 }
  0xd6   : > { %475 = vmatmul.bf16.gmra.mxu0 %v280_v21  ;;  %v289_v21 = vpack.c.bf16 %v253_v18, %v251_v17 }
  0xd7   : > { %564 = vmatmul.bf16.gmra.mxu1 %v281_v22  ;;  %v602_v28 = vpack.c.bf16 %v526_v25, %v526_v25 }
  0xd9   : > { %v666_v35 = vunpack.c.l.b16 %v602_v28  ;;  %v255_v28 = vld [vmem:[%s2078_s26 + $0x1c8] sm:$0xff] }
  0xdb   : > { %v438_v26 = vpop.f32.mrf.mxu0 }
  0xdc   : > { %v527_v27 = vpop.f32.mrf.mxu1 }
  0xdd   : > { %v528_v29 = vadd.f32 %v527_v27, %v438_v26  ;;  %v254_v26 = vld [vmem:[%s2078_s26 + $0x1c0] sm:$0xff]  ;;  %v256_v27 = vld [vmem:[%s2078_s26 + $0x1d0] sm:$0xff] }
  0xdf   : > { %v603_v30 = vpack.c.bf16 %v528_v29, %v528_v29  ;;  %v257_v29 = vld [vmem:[%s2078_s26 + $0x1d8] sm:$0xff] }
  0xe0   : > { %v291_v31 = vpack.c.bf16 %v257_v29, %v255_v28 }
  0xe1   : > { %v667_v36 = vunpack.c.l.b16 %v603_v30  ;;  %v290_v30 = vpack.c.bf16 %v256_v27, %v254_v26 }
  0xe3   : > { %v2180_v37 = vpack.c.b16 %v667_v36, %v666_v35  ;;  %v441_v40 = vpop.f32.mrf.mxu0  ;;  %v258_v36 = vld [vmem:[%s2078_s26 + $0x1e0] sm:$0xff] }
  0xe4   : > { %v530_v41 = vpop.f32.mrf.mxu1 }
  0xe5   : > { %690 = vrot.lane.b32.xlu1 %v2180_v37, %s1987_s11  ;;  %v531_v42 = vadd.f32 %v530_v41, %v441_v40  ;;  %v261_v40 = vld [vmem:[%s2078_s26 + $0x1f8] sm:$0xff] }
  0xe6   : > { %480 = vmatmul.bf16.gmra.mxu0 %v282_v38  ;;  %v260_v38 = vld [vmem:[%s2078_s26 + $0x1f0] sm:$0xff] }
  0xe7   : > { %569 = vmatmul.bf16.gmra.mxu1 %v283_v39  ;;  %v604_v45 = vpack.c.bf16 %v531_v42, %v531_v42  ;;  %v259_v39 = vld [vmem:[%s2078_s26 + $0x1e8] sm:$0xff]  ;;  %v292_v41 = vpack.c.bf16 %v260_v38, %v258_v36  ;;  %s1988_s26 = smov 64  }
  0xe8   : > { %v293_v42 = vpack.c.bf16 %v261_v40, %v259_v39 }
  0xe9   : > { %v668_v52 = vunpack.c.l.b16 %v604_v45 }
  0xeb   : > { %v443_v43 = vpop.f32.mrf.mxu0 }
  0xec   : > { %v532_v44 = vpop.f32.mrf.mxu1 }
  0xed   : > { %v533_v46 = vadd.f32 %v532_v44, %v443_v43 }
  0xef   : > { %v605_v47 = vpack.c.bf16 %v533_v46, %v533_v46 }
  0xf1   : > { %v669_v53 = vunpack.c.l.b16 %v605_v47 }
  0xf3   : > { %v2188_v54 = vpack.c.b16 %v669_v53, %v668_v52  ;;  %v446_v57 = vpop.f32.mrf.mxu0 }
  0xf4   : > { %v535_v58 = vpop.f32.mrf.mxu1 }
  0xf5   : > { %v536_v59 = vadd.f32 %v535_v58, %v446_v57  ;;  %692 = vrot.lane.b32.xlu2 %v2188_v54, %s1987_s11 }
  0xf6   : > { %485 = vmatmul.bf16.gmra.mxu0 %v284_v55 }
  0xf7   : > { %574 = vmatmul.bf16.gmra.mxu1 %v285_v56  ;;  %v606_v62 = vpack.c.bf16 %v536_v59, %v536_v59 }
  0xf9   : > { %v670_v5 = vunpack.c.l.b16 %v606_v62 }
  0xfb   : > { %v448_v60 = vpop.f32.mrf.mxu0 }
  0xfc   : > { %v537_v61 = vpop.f32.mrf.mxu1 }
  0xfd   : > { %v538_v63 = vadd.f32 %v537_v61, %v448_v60 }
  0xff   : > { %v607_v0 = vpack.c.bf16 %v538_v63, %v538_v63 }
 0x101   : > { %v671_v6 = vunpack.c.l.b16 %v607_v0 }
 0x103   : > { %v2196_v9 = vpack.c.b16 %v671_v6, %v670_v5  ;;  %v451_v10 = vpop.f32.mrf.mxu0 }
 0x104   : > { %v540_v11 = vpop.f32.mrf.mxu1 }
 0x105   : > { %v2198_v12 = vadd.f32 %v540_v11, %v451_v10 }
 0x106   : > { %490 = vmatmul.bf16.gmra.mxu0 %v286_v7 }
 0x107   : > { %579 = vmatmul.bf16.gmra.mxu1 %v287_v8 }
 0x10b   : > { %v2200_v13 = vpop.f32.mrf.mxu0 }
 0x10c   : > { %v542_v14 = vpop.f32.mrf.mxu1 }
 0x10d   : > { %v543_v6 = vadd.f32 %v542_v14, %v2200_v13  ;;  %v608_v13 = vpack.c.bf16 %v2198_v12, %v2198_v12 }
 0x10f   : > { %v672_v28 = vunpack.c.l.b16 %v608_v13 }
 0x113   : > { %v456_v22 = vpop.f32.mrf.mxu0 }
 0x114   : > { %v545_v23 = vpop.f32.mrf.mxu1 }
 0x115   : > { %v546_v0 = vadd.f32 %v545_v23, %v456_v22 }
 0x116   : > { %495 = vmatmul.bf16.gmra.mxu0 %v288_v19  ;;  %v609_v19 = vpack.c.bf16 %v543_v6, %v543_v6 }
 0x117   : > { %584 = vmatmul.bf16.gmra.mxu1 %v289_v21  ;;  %v610_v5 = vpack.c.bf16 %v546_v0, %v546_v0 }
 0x118   : > { %v673_v26 = vunpack.c.l.b16 %v609_v19 }
 0x119   : > { %v674_v17 = vunpack.c.l.b16 %v610_v5 }
 0x11a   : > { %v2233_v29 = vpack.c.b16 %v673_v26, %v672_v28 }
 0x11b   : > { %v458_v24 = vpop.f32.mrf.mxu0 }
 0x11c   : > { %v547_v25 = vpop.f32.mrf.mxu1 }
 0x11d   : > { %v548_v61 = vadd.f32 %v547_v25, %v458_v24 }
 0x11f   : > { %v611_v2 = vpack.c.bf16 %v548_v61, %v548_v61 }
 0x121   : > { %v675_v10 = vunpack.c.l.b16 %v611_v2 }
 0x123   : > { %v461_v32 = vpop.f32.mrf.mxu0  ;;  %v2223_v21 = vpack.c.b16 %v675_v10, %v674_v17 }
 0x124   : > { %v550_v33 = vpop.f32.mrf.mxu1 }
 0x125   : > { %v551_v51 = vadd.f32 %v550_v33, %v461_v32  ;;  %v745_v27 = vsel %vm704_vm0, %v2223_v21, 0 }
 0x126   : > { %500 = vmatmul.bf16.gmra.mxu0 %v290_v30 }
 0x127   : > { %589 = vmatmul.bf16.gmra.mxu1 %v291_v31  ;;  %v612_v57 = vpack.c.bf16 %v551_v51, %v551_v51 }
 0x129   : > { %v676_v1 = vunpack.c.l.b16 %v612_v57 }
 0x12b   : > { %v463_v34 = vpop.f32.mrf.mxu0 }
 0x12c   : > { %v552_v35 = vpop.f32.mrf.mxu1 }
 0x12d   : > { %v553_v48 = vadd.f32 %v552_v35, %v463_v34  ;;  %v742_v34 = vsel %vm704_vm0, %v2233_v29, 0 }
 0x12f   : > { %v613_v53 = vpack.c.bf16 %v553_v48, %v553_v48  ;;  %v736_v48 = vsel %vm704_vm0, %v2188_v54, 0 }
 0x131   : > { %v677_v62 = vunpack.c.l.b16 %v613_v53 }
 0x133   : > { %v466_v43 = vpop.f32.mrf.mxu0  ;;  %v2218_v3 = vpack.c.b16 %v677_v62, %v676_v1 }
 0x134   : > { %v555_v44 = vpop.f32.mrf.mxu1 }
 0x135   : > { %v556_v45 = vadd.f32 %v555_v44, %v466_v43  ;;  %v748_v16 = vsel %vm704_vm0, %v2218_v3, 0 }
 0x136   : > { %505 = vmatmul.bf16.gmra.mxu0 %v292_v41 }
 0x137   : > { %594 = vmatmul.bf16.gmra.mxu1 %v293_v42  ;;  %v614_v49 = vpack.c.bf16 %v556_v45, %v556_v45  ;;  %v739_v42 = vsel %vm704_vm0, %v2196_v9, 0 }
 0x139   : > { %v678_v55 = vunpack.c.l.b16 %v614_v49 }
 0x13b   : > { %v468_v46 = vpop.f32.mrf.mxu0 }
 0x13c   : > { %v557_v47 = vpop.f32.mrf.mxu1 }
 0x13d   : > { %v558_v50 = vadd.f32 %v557_v47, %v468_v46 }
 0x13f   : > { %v615_v52 = vpack.c.bf16 %v558_v50, %v558_v50 }
 0x141   : > { %v679_v56 = vunpack.c.l.b16 %v615_v52 }
 0x143   : > { %v2214_v58 = vpack.c.b16 %v679_v56, %v678_v55  ;;  %v471_v59 = vpop.f32.mrf.mxu0  ;;  %v733_v56 = vsel %vm704_vm0, %v2180_v37, 0 }
 0x144   : > { %v560_v60 = vpop.f32.mrf.mxu1 }
 0x145   : > { %v751_v63 = vsel %vm704_vm0, %v2214_v58, 0  ;;  %v561_v4 = vadd.f32 %v560_v60, %v471_v59 }
 0x146   : > { %753 = vmatpush.bf16.xpose.msrb.mxu0 %v751_v63  ;;  %1732 = vmatpush.bf16.xpose.msra.mxu2 %v751_v63  ;;  %v730_v63 = vsel %vm704_vm0, %v2172_v20, 0 }
 0x147   : > { %v616_v11 = vpack.c.bf16 %v561_v4, %v561_v4  ;;  %v689_v4 = vpop.permute.xlu0 %688 }
 0x149   : > { %v818_v22 = vunpack.c.l.b16 %v616_v11 }
 0x14b   : > { %v473_v7 = vpop.f32.mrf.mxu0 }
 0x14c   : > { %v562_v8 = vpop.f32.mrf.mxu1 }
 0x14d   : > { %v563_v15 = vadd.f32 %v562_v8, %v473_v7 }
 0x14e   : > { %754 = vmatpush.bf16.xpose.msrb.mxu0 %v748_v16  ;;  %1733 = vmatpush.bf16.xpose.msra.mxu2 %v748_v16 }
 0x14f   : > { %v617_v18 = vpack.c.bf16 %v563_v15, %v563_v15 }
 0x151   : > { %v819_v23 = vunpack.c.l.b16 %v617_v18 }
 0x153   : > { %v2227_v14 = vpack.c.b16 %v819_v23, %v818_v22  ;;  %v476_v24 = vpop.f32.mrf.mxu0  ;;  %v693_v23 = vpop.permute.xlu2 %692 }
 0x154   : > { %v565_v25 = vpop.f32.mrf.mxu1 }
 0x155   : > { %842 = vrot.lane.b32.xlu0 %v2227_v14, %s1987_s11  ;;  %v566_v30 = vadd.f32 %v565_v25, %v476_v24 }
 0x156   : > { %755 = vmatpush.bf16.xpose.msrb.mxu0 %v745_v27  ;;  %1734 = vmatpush.bf16.xpose.msra.mxu2 %v745_v27 }
 0x157   : > { %v618_v12 = vpack.c.bf16 %v566_v30, %v566_v30  ;;  %v691_v5 = vpop.permute.xlu1 %690 }
 0x159   : > { %v820_v36 = vunpack.c.l.b16 %v618_v12 }
 0x15b   : > { %v478_v31 = vpop.f32.mrf.mxu0 }
 0x15c   : > { %v567_v32 = vpop.f32.mrf.mxu1 }
 0x15d   : > { %v568_v33 = vadd.f32 %v567_v32, %v478_v31  ;;  %694 = vrot.lane.b32.xlu0 %v2196_v9, %s1987_s11 }
 0x15e   : > { %756 = vmatpush.bf16.xpose.msrb.mxu0 %v742_v34  ;;  %1735 = vmatpush.bf16.xpose.msra.mxu2 %v742_v34 }
 0x15f   : > { %v619_v35 = vpack.c.bf16 %v568_v33, %v568_v33 }
 0x161   : > { %v821_v38 = vunpack.c.l.b16 %v619_v35 }
 0x163   : > { %v2239_v39 = vpack.c.b16 %v821_v38, %v820_v36  ;;  %v481_v40 = vpop.f32.mrf.mxu0 }
 0x164   : > { %v570_v41 = vpop.f32.mrf.mxu1 }
 0x165   : > { %844 = vrot.lane.b32.xlu1 %v2239_v39, %s1987_s11  ;;  %v571_v43 = vadd.f32 %v570_v41, %v481_v40 }
 0x166   : > { %757 = vmatpush.bf16.xpose.msrb.mxu0 %v739_v42  ;;  %1736 = vmatpush.bf16.xpose.msra.mxu2 %v739_v42 }
 0x167   : > { %v620_v46 = vpack.c.bf16 %v571_v43, %v571_v43 }
 0x169   : > { %v822_v50 = vunpack.c.l.b16 %v620_v46 }
 0x16b   : > { %v483_v44 = vpop.f32.mrf.mxu0 }
 0x16c   : > { %v572_v45 = vpop.f32.mrf.mxu1 }
 0x16d   : > { %v573_v47 = vadd.f32 %v572_v45, %v483_v44 }
 0x16e   : > { %758 = vmatpush.bf16.xpose.msrb.mxu0 %v736_v48  ;;  %1737 = vmatpush.bf16.xpose.msra.mxu2 %v736_v48 }
 0x16f   : > { %v621_v49 = vpack.c.bf16 %v573_v47, %v573_v47 }
 0x171   : > { %v823_v51 = vunpack.c.l.b16 %v621_v49 }
 0x173   : > { %v2247_v52 = vpack.c.b16 %v823_v51, %v822_v50  ;;  %v486_v53 = vpop.f32.mrf.mxu0 }
 0x174   : > { %v575_v55 = vpop.f32.mrf.mxu1 }
 0x175   : > { %846 = vrot.lane.b32.xlu2 %v2247_v52, %s1987_s11  ;;  %v576_v57 = vadd.f32 %v575_v55, %v486_v53 }
 0x176   : > { %759 = vmatpush.bf16.xpose.msrb.mxu0 %v733_v56  ;;  %1738 = vmatpush.bf16.xpose.msra.mxu2 %v733_v56 }
 0x177   : > { %v622_v61 = vpack.c.bf16 %v576_v57, %v576_v57 }
 0x179   : > { %v824_v1 = vunpack.c.l.b16 %v622_v61 }
 0x17b   : > { %v488_v59 = vpop.f32.mrf.mxu0 }
 0x17c   : > { %v577_v60 = vpop.f32.mrf.mxu1 }
 0x17d   : > { %v578_v62 = vadd.f32 %v577_v60, %v488_v59  ;;  %696 = vrot.lane.b32.xlu2 %v2233_v29, %s1987_s11 }
 0x17e   : > { %760 = vmatpush.bf16.xpose.msrb.mxu0 %v730_v63  ;;  %1739 = vmatpush.bf16.xpose.msra.mxu2 %v730_v63 }
 0x17f   : > { %v623_v0 = vpack.c.bf16 %v578_v62, %v578_v62 }
 0x181   : > { %v825_v2 = vunpack.c.l.b16 %v623_v0 }
 0x183   : > { %v2257_v6 = vpack.c.b16 %v825_v2, %v824_v1  ;;  %v491_v7 = vpop.f32.mrf.mxu0  ;;  %v886_v1 = vsel %vm704_vm0, %v2239_v39, 0 }
 0x184   : > { %v580_v8 = vpop.f32.mrf.mxu1 }
 0x185   : > { %1695 = vmatmul.msk.bf16.vlgmr.msrb.gmra.mxu0 %vm704_vm0, %v689_v4  ;;  %1696 = vmatmul.msk.bf16.vlgmr.msra.gmra.mxu2 %vm704_vm0, %v691_v5  ;;  %v581_v10 = vadd.f32 %v580_v8, %v491_v7  ;;  %v883_v4 = vsel %vm704_vm0, %v2227_v14, 0 }
 0x186   : > { %702 = vrot.lane.b32.xlu2 %v2214_v58, %s1987_s11  ;;  %848 = vrot.lane.b32.xlu1 %v2257_v6, %s1987_s11 }
 0x187   : > { %v624_v16 = vpack.c.bf16 %v581_v10, %v581_v10  ;;  %v2334_v10 = vld [vmem:[%s2774_s2 + $0x8] sm:$0xff] }
 0x189   : > { %v826_v19 = vunpack.c.l.b16 %v624_v16  ;;  %v2339_v16 = vld [vmem:[%s2774_s2 + $0x10] sm:$0xff] }
 0x18b   : > { %v493_v11 = vpop.f32.mrf.mxu0 }
 0x18c   : > { %v582_v15 = vpop.f32.mrf.mxu1 }
 0x18d   : > { %v583_v17 = vadd.f32 %v582_v15, %v493_v11 }
 0x18e   : > { %698 = vrot.lane.b32.xlu1 %v2223_v21, %s1987_s11 }
 0x18f   : > { %v625_v18 = vpack.c.bf16 %v583_v17, %v583_v17 }
 0x191   : > { %v827_v22 = vunpack.c.l.b16 %v625_v18 }
 0x193   : > { %v2267_v13 = vpack.c.b16 %v827_v22, %v826_v19  ;;  %v496_v24 = vpop.f32.mrf.mxu0 }
 0x194   : > { %v585_v25 = vpop.f32.mrf.mxu1 }
 0x195   : > { %1697 = vmatmul.msk.bf16.gmra.mxu2 %vm704_vm0, %v693_v23  ;;  %850 = vrot.lane.b32.xlu0 %v2267_v13, %s1987_s11  ;;  %v586_v26 = vadd.f32 %v585_v25, %v496_v24  ;;  %v2352_v23 = vld [vmem:[%s2774_s2 + $0x18] sm:$0xff] }
 0x196   : > { %1333 = vrot.lane.b32.xlu1 %v2223_v21, %s1988_s26 }
 0x197   : > { %v626_v30 = vpack.c.bf16 %v586_v26, %v586_v26  ;;  %v2363_v26 = vld [vmem:[%s2774_s2 + $0x20] sm:$0xff] }
 0x199   : > { %v828_v12 = vunpack.c.l.b16 %v626_v30 }
 0x19b   : > { %v498_v27 = vpop.f32.mrf.mxu0 }
 0x19c   : > { %v587_v28 = vpop.f32.mrf.mxu1 }
 0x19d   : > { %v588_v31 = vadd.f32 %v587_v28, %v498_v27  ;;  %700 = vrot.lane.b32.xlu0 %v2218_v3, %s1987_s11 }
 0x19f   : > { %v627_v32 = vpack.c.bf16 %v588_v31, %v588_v31  ;;  %v2372_v31 = vld [vmem:[%s2774_s2 + $0x28] sm:$0xff] }
 0x1a1   : > { %v829_v33 = vunpack.c.l.b16 %v627_v32 }
 0x1a3   : > { %v839_v34 = vpack.c.b16 %v829_v33, %v828_v12  ;;  %v501_v35 = vpop.f32.mrf.mxu0 }
 0x1a4   : > { %v590_v36 = vpop.f32.mrf.mxu1 }
 0x1a5   : > { %1337 = vrot.lane.b32.xlu0 %v2214_v58, %s1988_s26  ;;  %852 = vrot.lane.b32.xlu2 %v839_v34, %s1987_s11  ;;  %v591_v21 = vadd.f32 %v590_v36, %v501_v35  ;;  %v898_v62 = vsel %vm704_vm0, %v839_v34, 0 }
 0x1a7   : > { %v628_v41 = vpack.c.bf16 %v591_v21, %v591_v21 }
 0x1a9   : > { %v830_v44 = vunpack.c.l.b16 %v628_v41 }
 0x1ab   : > { %v503_v38 = vpop.f32.mrf.mxu0 }
 0x1ac   : > { %v592_v40 = vpop.f32.mrf.mxu1 }
 0x1ad   : > { %v593_v42 = vadd.f32 %v592_v40, %v503_v38  ;;  %1454 = vrot.lane.b32.xlu0 %v839_v34, %s1988_s26  ;;  %1335 = vrot.lane.b32.xlu2 %v2218_v3, %s1988_s26 }
 0x1af   : > { %v629_v43 = vpack.c.bf16 %v593_v42, %v593_v42 }
 0x1b1   : > { %v831_v45 = vunpack.c.l.b16 %v629_v43 }
 0x1b3   : > { %v840_v46 = vpack.c.b16 %v831_v45, %v830_v44  ;;  %v506_v47 = vpop.f32.mrf.mxu0 }
 0x1b4   : > { %v595_v48 = vpop.f32.mrf.mxu1 }
 0x1b5   : > { %1329 = vrot.lane.b32.xlu2 %v2196_v9, %s1988_s26  ;;  %1456 = vrot.lane.b32.xlu0 %v840_v46, %s1988_s26  ;;  %v596_v58 = vadd.f32 %v595_v48, %v506_v47  ;;  %v901_v60 = vsel %vm704_vm0, %v840_v46, 0 }
 0x1b6   : > { %854 = vrot.lane.b32.xlu1 %v840_v46, %s1987_s11 }
 0x1b7   : > { %v630_v51 = vpack.c.bf16 %v596_v58, %v596_v58  ;;  %v2385_v58 = vld [vmem:[%s2774_s2 + $0x30] sm:$0xff] }
 0x1b9   : > { %v832_v55 = vunpack.c.l.b16 %v630_v51  ;;  %v2395_v51 = vld [vmem:[%s2774_s2 + $0x38] sm:$0xff] }
 0x1bb   : > { %v508_v49 = vpop.f32.mrf.mxu0 }
 0x1bc   : > { %v597_v50 = vpop.f32.mrf.mxu1 }
 0x1bd   : > { %v598_v53 = vadd.f32 %v597_v50, %v508_v49  ;;  %1446 = vrot.lane.b32.xlu2 %v2239_v39, %s1988_s26 }
 0x1be   : > { %1452 = vrot.lane.b32.xlu1 %v2267_v13, %s1988_s26 }
 0x1bf   : > { %v631_v3 = vpack.c.bf16 %v598_v53, %v598_v53 }
 0x1c1   : > { %v833_v56 = vunpack.c.l.b16 %v631_v3 }
 0x1c3   : > { %v841_v57 = vpack.c.b16 %v833_v56, %v832_v55  ;;  %v2404_v55 = vld [vmem:[%s2774_s2 + $0x40] sm:$0xff] }
 0x1c5   : > { %1323 = vrot.lane.b32.xlu2 %v2172_v20, %s1988_s26  ;;  %856 = vrot.lane.b32.xlu0 %v841_v57, %s1987_s11  ;;  %v904_v9 = vsel %vm704_vm0, %v841_v57, 0 }
 0x1c6   : > { %1450 = vrot.lane.b32.xlu1 %v2257_v6, %s1988_s26  ;;  %906 = vmatpush.bf16.xpose.msrb.mxu1 %v904_v9 }
 0x1c7   : > { %1740 = vmatpush.bf16.xpose.msra.mxu3 %v904_v9  ;;  %v843_v59 = vpop.permute.xlu0 %842  ;;  %v2414_v9 = vld [vmem:[%s2774_s2 + $0x48] sm:$0xff] }
 0x1cd   : > { %1331 = vrot.lane.b32.xlu0 %v2233_v29, %s1988_s26  ;;  %v895_v29 = vsel %vm704_vm0, %v2267_v13, 0 }
 0x1ce   : > { %1448 = vrot.lane.b32.xlu1 %v2247_v52, %s1988_s26  ;;  %907 = vmatpush.bf16.xpose.msrb.mxu1 %v901_v60 }
 0x1cf   : > { %1741 = vmatpush.bf16.xpose.msra.mxu3 %v901_v60  ;;  %v695_v20 = vpop.permute.xlu0 %694  ;;  %v847_v61 = vpop.permute.xlu2 %846 }
 0x1d0   : > { %1698 = vmatmul.msk.bf16.gmra.mxu2 %vm704_vm0, %v695_v20 }
 0x1d5   : > { %1327 = vrot.lane.b32.xlu0 %v2188_v54, %s1988_s26  ;;  %v892_v54 = vsel %vm704_vm0, %v2257_v6, 0 }
 0x1d6   : > { %1325 = vrot.lane.b32.xlu1 %v2180_v37, %s1988_s26  ;;  %908 = vmatpush.bf16.xpose.msrb.mxu1 %v898_v62  ;;  %v889_v37 = vsel %vm704_vm0, %v2247_v52, 0  ;;  %v2323_v52 = vld [vmem:[%s2774_s2] sm:$0xff] }
 0x1d7   : > { %1742 = vmatpush.bf16.xpose.msra.mxu3 %v898_v62  ;;  %v697_v63 = vpop.permute.xlu2 %696  ;;  %v845_v0 = vpop.permute.xlu1 %844 }
 0x1de   : > { %1458 = vrot.lane.b32.xlu1 %v841_v57, %s1988_s26  ;;  %909 = vmatpush.bf16.xpose.msrb.mxu1 %v895_v29 }
 0x1df   : > { %1743 = vmatpush.bf16.xpose.msra.mxu3 %v895_v29 }
 0x1e0   : > { %1699 = vmatmul.msk.bf16.gmra.mxu2 %vm704_vm0, %v697_v63  ;;  %v703_v11 = vpop.permute.xlu2 %702 }
 0x1e6   : > { %910 = vmatpush.bf16.xpose.msrb.mxu1 %v892_v54 }
 0x1e7   : > { %1744 = vmatpush.bf16.xpose.msra.mxu3 %v892_v54 }
 0x1ee   : > { %911 = vmatpush.bf16.xpose.msrb.mxu1 %v889_v37 }
 0x1ef   : > { %1745 = vmatpush.bf16.xpose.msra.mxu3 %v889_v37 }
 0x1f6   : > { %912 = vmatpush.bf16.xpose.msrb.mxu1 %v886_v1 }
 0x1f7   : > { %1746 = vmatpush.bf16.xpose.msra.mxu3 %v886_v1 }
 0x1f8   : > { %v849_v2 = vpop.permute.xlu1 %848 }
 0x1fe   : > { %913 = vmatpush.bf16.xpose.msrb.mxu1 %v883_v4 }
 0x1ff   : > { %1747 = vmatpush.bf16.xpose.msra.mxu3 %v883_v4  ;;  %v853_v13 = vpop.permute.xlu2 %852 }
 0x200   : > { %v699_v5 = vpop.permute.xlu1 %698 }
 0x201   : > { %1700 = vmatmul.msk.bf16.gmra.mxu2 %vm704_vm0, %v699_v5 }
 0x202   : > { %v762_v6 = vpop.f32.mrf.mxu0 }
 0x203   : > { %v2327_v39 = vadd.f32 %v762_v6, %v2323_v52 }
 0x205   : > { %1703 = vmatmul.msk.bf16.vlgmr.msrb.gmra.mxu1 %vm704_vm0, %v843_v59 }
 0x206   : > { %1704 = vmatmul.msk.bf16.vlgmr.msra.gmra.mxu3 %vm704_vm0, %v845_v0 }
 0x207   : > { %v851_v7 = vpop.permute.xlu0 %850  ;;  %v1336_v28 = vpop.permute.xlu2 %1335 }
 0x208   : > { %955 = vmax.xlane.f32.xlu1 %v2327_v39  ;;  %v767_v8 = vpop.f32.mrf.mxu2  ;;  %v1334_v32 = vpop.permute.xlu1 %1333 }
 0x209   : > { %v2346_v18 = vadd.f32 %v767_v8, %v2339_v16 }
 0x20a   : > { %v764_v15 = vpop.f32.mrf.mxu0 }
 0x20b   : > { %v2342_v17 = vadd.f32 %v764_v15, %v2334_v10 }
 0x20d   : > { %957 = vmax.xlane.f32.xlu2 %v2342_v17 }
 0x20f   : > { %v701_v19 = vpop.permute.xlu0 %700  ;;  %v1330_v41 = vpop.permute.xlu2 %1329 }
 0x210   : > { %959 = vmax.xlane.f32.xlu1 %v2346_v18  ;;  %v769_v22 = vpop.f32.mrf.mxu2 }
 0x211   : > { %1701 = vmatmul.msk.bf16.gmra.mxu2 %vm704_vm0, %v701_v19  ;;  %v2356_v24 = vadd.f32 %v769_v22, %v2352_v23 }
 0x215   : > { %961 = vmax.xlane.f32.xlu2 %v2356_v24 }
 0x216   : > { %1705 = vmatmul.msk.bf16.gmra.mxu3 %vm704_vm0, %v847_v61 }
 0x217   : > { %v1338_v25 = vpop.permute.xlu0 %1337  ;;  %v1447_v44 = vpop.permute.xlu2 %1446 }
 0x218   : > { %v772_v27 = vpop.f32.mrf.mxu2  ;;  %1347 = vmatpush.bf16.msrb.mxu2 %v1338_v25 }
 0x219   : > { %v2366_v30 = vadd.f32 %v772_v27, %v2363_v26 }
 0x21c   : > { %1348 = vmatpush.bf16.msrb.mxu2 %v1336_v28  ;;  %v642_v28 = vld [vmem:[%s2774_s2 + $0x50] sm:$0xff] }
 0x21d   : > { %963 = vmax.xlane.f32.xlu2 %v2366_v30 }
 0x21f   : > { %v1455_v34 = vpop.permute.xlu0 %1454  ;;  %v1324_v47 = vpop.permute.xlu2 %1323 }
 0x220   : > { %v774_v12 = vpop.f32.mrf.mxu2  ;;  %1349 = vmatpush.bf16.msrb.mxu2 %v1334_v32 }
 0x221   : > { %1702 = vmatmul.msk.bf16.gmra.mxu2 %vm704_vm0, %v703_v11  ;;  %v2376_v33 = vadd.f32 %v774_v12, %v2372_v31 }
 0x223   : > { %965 = vmax.xlane.f32.xlu0 %v2376_v33 }
 0x226   : > { %1706 = vmatmul.msk.bf16.gmra.mxu3 %vm704_vm0, %v849_v2 }
 0x227   : > { %v1457_v36 = vpop.permute.xlu0 %1456 }
 0x228   : > { %v855_v35 = vpop.permute.xlu1 %854 }
 0x230   : > { %v1453_v21 = vpop.permute.xlu1 %1452 }
 0x236   : > { %1707 = vmatmul.msk.bf16.gmra.mxu3 %vm704_vm0, %v851_v7 }
 0x237   : > { %v857_v38 = vpop.permute.xlu0 %856 }
 0x238   : > { %v1451_v40 = vpop.permute.xlu1 %1450 }
 0x23f   : > { %v1332_v42 = vpop.permute.xlu0 %1331 }
 0x240   : > { %v1449_v43 = vpop.permute.xlu1 %1448  ;;  %1350 = vmatpush.bf16.msrb.mxu2 %v1332_v42 }
 0x244   : > { %1351 = vmatpush.bf16.msrb.mxu2 %v1330_v41 }
 0x246   : > { %1708 = vmatmul.msk.bf16.gmra.mxu3 %vm704_vm0, %v853_v13 }
 0x247   : > { %v1328_v45 = vpop.permute.xlu0 %1327 }
 0x248   : > { %v1326_v46 = vpop.permute.xlu1 %1325  ;;  %1352 = vmatpush.bf16.msrb.mxu2 %v1328_v45 }
 0x24c   : > { %1353 = vmatpush.bf16.msrb.mxu2 %v1326_v46 }
 0x250   : > { %v1459_v48 = vpop.permute.xlu1 %1458  ;;  %1354 = vmatpush.bf16.msrb.mxu2 %v1324_v47 }
 0x251   : > { %1468 = vmatpush.bf16.msrb.mxu3 %v1459_v48 }
 0x253   : > { %v777_v49 = vpop.f32.mrf.mxu2 }
 0x254   : > { %v2388_v50 = vadd.f32 %v777_v49, %v2385_v58 }
 0x255   : > { %1469 = vmatpush.bf16.msrb.mxu3 %v1457_v36 }
 0x256   : > { %1709 = vmatmul.msk.bf16.gmra.mxu3 %vm704_vm0, %v855_v35  ;;  %967 = vmax.xlane.f32.xlu2 %v2388_v50 }
 0x259   : > { %1470 = vmatpush.bf16.msrb.mxu3 %v1455_v34 }
 0x25b   : > { %v779_v53 = vpop.f32.mrf.mxu2 }
 0x25c   : > { %v2398_v3 = vadd.f32 %v779_v53, %v2395_v51 }
 0x25d   : > { %1471 = vmatpush.bf16.msrb.mxu3 %v1453_v21 }
 0x25e   : > { %969 = vmax.xlane.f32.xlu1 %v2398_v3 }
 0x261   : > { %1472 = vmatpush.bf16.msrb.mxu3 %v1451_v40 }
 0x263   : > { %v782_v56 = vpop.f32.mrf.mxu2 }
 0x264   : > { %v2407_v57 = vadd.f32 %v782_v56, %v2404_v55 }
 0x265   : > { %1473 = vmatpush.bf16.msrb.mxu3 %v1449_v43 }
 0x266   : > { %1710 = vmatmul.msk.bf16.gmra.mxu3 %vm704_vm0, %v857_v38  ;;  %971 = vmax.xlane.f32.xlu0 %v2407_v57 }
 0x269   : > { %1474 = vmatpush.bf16.msrb.mxu3 %v1447_v44 }
 0x26b   : > { %v784_v59 = vpop.f32.mrf.mxu2 }
 0x26c   : > { %v2417_v60 = vadd.f32 %v784_v59, %v2414_v9 }
 0x26e   : > { %973 = vmax.xlane.f32.xlu1 %v2417_v60 }
 0x27b   : > { %v956_v20 = vpop.xlane.xlu1 %955 }
 0x27c   : > { %v1019_v61 = vsub.f32 %v2327_v39, %v956_v20 }
 0x27e   : > { %v1051_v62 = vmul.f32 1.442695, %v1019_v61 }
 0x280   : > { %1791 = vpow2.f32 %v1051_v62  ;;  %v958_v29 = vpop.xlane.xlu2 %957 }
 0x281   : > { %v1020_v0 = vsub.f32 %v2342_v17, %v958_v29 }
 0x282   : > { %v915_v63 = vpop.f32.mrf.mxu1 }
 0x283   : > { %v2422_v54 = vadd.f32 %v915_v63, %v2323_v52  ;;  %v1053_v5 = vmul.f32 1.442695, %v1020_v0  ;;  %v960_v39 = vpop.xlane.xlu1 %959 }
 0x284   : > { %v1021_v11 = vsub.f32 %v2346_v18, %v960_v39 }
 0x285   : > { %987 = vmax.xlane.f32.xlu0 %v2422_v54  ;;  %1793 = vpow2.f32 %v1053_v5 }
 0x286   : > { %v2425_v37 = vpop.eup %1791  ;;  %v1055_v22 = vmul.f32 1.442695, %v1021_v11 }
 0x287   : > { %1115 = vadd.xlane.f32.xlu2 %v2425_v37 }
 0x288   : > { %v962_v1 = vpop.xlane.xlu2 %961 }
 0x289   : > { %v1022_v2 = vsub.f32 %v2356_v24, %v962_v1  ;;  %v920_v4 = vpop.f32.mrf.mxu3 }
 0x28a   : > { %v917_v6 = vpop.f32.mrf.mxu1  ;;  %v2431_v7 = vadd.f32 %v920_v4, %v2339_v16 }
 0x28b   : > { %v2434_v52 = vadd.f32 %v917_v6, %v2334_v10  ;;  %v1057_v8 = vmul.f32 1.442695, %v1022_v2  ;;  %v2443_v13 = vpop.eup %1793 }
 0x28d   : > { %991 = vmax.xlane.f32.xlu0 %v2431_v7  ;;  %1795 = vpow2.f32 %v1057_v8 }
 0x28e   : > { %1797 = vpow2.f32 %v1055_v22 }
 0x28f   : > { %989 = vmax.xlane.f32.xlu2 %v2434_v52 }
 0x290   : > { %v964_v15 = vpop.xlane.xlu2 %963 }
 0x291   : > { %v1023_v17 = vsub.f32 %v2366_v30, %v964_v15  ;;  %v922_v19 = vpop.f32.mrf.mxu3  ;;  %v787_v30 = vpop.f32.mrf.mxu2 }
 0x292   : > { %v2441_v16 = vadd.f32 %v922_v19, %v2352_v23  ;;  %v2463_v12 = vadd.f32 %v787_v30, %v642_v28 }
 0x293   : > { %v1059_v10 = vmul.f32 1.442695, %v1023_v17  ;;  %v2447_v24 = vpop.eup %1795 }
 0x294   : > { %993 = vmax.xlane.f32.xlu1 %v2441_v16  ;;  %v2453_v27 = vpop.eup %1797 }
 0x295   : > { %1117 = vadd.xlane.f32.xlu0 %v2443_v13  ;;  %1799 = vpow2.f32 %v1059_v10 }
 0x296   : > { %v966_v53 = vpop.xlane.xlu0 %965 }
 0x297   : > { %1121 = vadd.xlane.f32.xlu2 %v2447_v24  ;;  %v1024_v22 = vsub.f32 %v2376_v33, %v966_v53 }
 0x299   : > { %v925_v18 = vpop.f32.mrf.mxu3  ;;  %v789_v48 = vpop.f32.mrf.mxu2  ;;  %v1061_v30 = vmul.f32 1.442695, %v1024_v22 }
 0x29a   : > { %v2451_v25 = vadd.f32 %v925_v18, %v2363_v26 }
 0x29b   : > { %v2457_v23 = vpop.eup %1799 }
 0x29c   : > { %995 = vmax.xlane.f32.xlu1 %v2451_v25 }
 0x29d   : > { %1119 = vadd.xlane.f32.xlu0 %v2453_v27 }
 0x29f   : > { %1123 = vadd.xlane.f32.xlu2 %v2457_v23 }
 0x2a1   : > { %v927_v32 = vpop.f32.mrf.mxu3  ;;  %v792_v4 = vpop.f32.mrf.mxu2 }
 0x2a2   : > { %v2467_v26 = vadd.f32 %v927_v32, %v2372_v31 }
 0x2a5   : > { %975 = vmax.xlane.f32.xlu0 %v2463_v12 }
 0x2a7   : > { %997 = vmax.xlane.f32.xlu2 %v2467_v26 }
 0x2a9   : > { %v930_v34 = vpop.f32.mrf.mxu3 }
 0x2aa   : > { %v2471_v35 = vadd.f32 %v930_v34, %v2385_v58 }
 0x2ad   : > { %999 = vmax.xlane.f32.xlu0 %v2471_v35 }
 0x2b1   : > { %v932_v36 = vpop.f32.mrf.mxu3 }
 0x2b2   : > { %v2475_v21 = vadd.f32 %v932_v36, %v2395_v51 }
 0x2b4   : > { %1001 = vmax.xlane.f32.xlu2 %v2475_v21 }
 0x2b5   : > { %1444 = vrot.lane.b32.xlu1 %v2227_v14, %s1988_s26  ;;  %v643_v14 = vld [vmem:[%s2774_s2 + $0x58] sm:$0xff] }
 0x2b6   : > { %v2498_v49 = vadd.f32 %v789_v48, %v643_v14 }
 0x2b9   : > { %v935_v38 = vpop.f32.mrf.mxu3 }
 0x2ba   : > { %v2481_v31 = vadd.f32 %v935_v38, %v2404_v55 }
 0x2bc   : > { %1003 = vmax.xlane.f32.xlu2 %v2481_v31 }
 0x2c1   : > { %v937_v40 = vpop.f32.mrf.mxu3 }
 0x2c2   : > { %v2485_v41 = vadd.f32 %v937_v40, %v2414_v9 }
 0x2c4   : > { %1005 = vmax.xlane.f32.xlu0 %v2485_v41 }
 0x2c9   : > { %v940_v42 = vpop.f32.mrf.mxu3  ;;  %v968_v46 = vpop.xlane.xlu2 %967 }
 0x2ca   : > { %v2488_v43 = vadd.f32 %v940_v42, %v642_v28  ;;  %v1025_v47 = vsub.f32 %v2388_v50, %v968_v46 }
 0x2cc   : > { %1007 = vmax.xlane.f32.xlu2 %v2488_v43  ;;  %v1063_v58 = vmul.f32 1.442695, %v1025_v47 }
 0x2ce   : > { %1801 = vpow2.f32 %v1063_v58 }
 0x2d1   : > { %v942_v44 = vpop.f32.mrf.mxu3  ;;  %v2506_v56 = vpop.xlane.xlu1 %969 }
 0x2d2   : > { %v2494_v45 = vadd.f32 %v942_v44, %v643_v14 }
 0x2d4   : > { %1009 = vmax.xlane.f32.xlu0 %v2494_v45  ;;  %v2501_v51 = vpop.eup %1801 }
 0x2d9   : > { %v2504_v55 = vpop.xlane.xlu0 %971  ;;  %v945_v44 = vpop.f32.mrf.mxu3 }
 0x2df   : > { %977 = vmax.xlane.f32.xlu1 %v2498_v49 }
 0x2e1   : > { %v2509_v61 = vpop.xlane.xlu1 %973 }
 0x2e7   : > { %1127 = vadd.xlane.f32.xlu1 %v2501_v51 }
 0x2f8   : > { %v988_v9 = vpop.xlane.xlu0 %987 }
 0x2f9   : > { %v1035_v59 = vsub.f32 %v2422_v54, %v988_v9  ;;  %v644_v54 = vld [vmem:[%s2774_s2 + $0x60] sm:$0xff]  ;;  %v1026_v9 = vsub.f32 %v2398_v3, %v2506_v56 }
 0x2fa   : > { %v1116_v50 = vpop.xlane.xlu2 %1115  ;;  %v2520_v11 = vadd.f32 %v792_v4, %v644_v54  ;;  %v2538_v48 = vadd.f32 %v945_v44, %v644_v54  ;;  %v947_v54 = vpop.f32.mrf.mxu3 }
 0x2fb   : > { %v1083_v20 = vmul.f32 1.442695, %v1035_v59 }
 0x2fd   : > { %1803 = vpow2.f32 %v1083_v20  ;;  %v794_v20 = vpop.f32.mrf.mxu2 }
 0x2fe   : > { %1805 = vrcp.f32 %v1116_v50  ;;  %v645_v50 = vld [vmem:[%s2774_s2 + $0x68] sm:$0xff] }
 0x300   : > { %v992_v62 = vpop.xlane.xlu0 %991 }
 0x301   : > { %v1037_v29 = vsub.f32 %v2431_v7, %v992_v62 }
 0x302   : > { %v990_v63 = vpop.xlane.xlu2 %989 }
 0x303   : > { %v2512_v0 = vpop.eup %1803  ;;  %v1087_v1 = vmul.f32 1.442695, %v1037_v29  ;;  %v1036_v2 = vsub.f32 %v2434_v52, %v990_v63  ;;  %v1065_v29 = vmul.f32 1.442695, %v1026_v9  ;;  %v2551_v63 = vadd.f32 %v794_v20, %v645_v50 }
 0x304   : > { %1147 = vadd.xlane.f32.xlu2 %v2512_v0  ;;  %v1806_v8 = vpop.eup %1805 }
 0x305   : > { %1807 = vpow2.f32 %v1087_v1  ;;  %v1085_v6 = vmul.f32 1.442695, %v1036_v2  ;;  %v1211_v19 = vmul.f32 %v1806_v8, %v2425_v37  ;;  %v2559_v8 = vadd.f32 %v947_v54, %v645_v50 }
 0x307   : > { %v994_v5 = vpop.xlane.xlu1 %993  ;;  %v1243_v28 = vpack.c.bf16 %v1211_v19, %v1211_v19  ;;  %v950_v19 = vpop.f32.mrf.mxu3 }
 0x308   : > { %v1038_v39 = vsub.f32 %v2441_v16, %v994_v5  ;;  %v1118_v7 = vpop.xlane.xlu0 %1117 }
 0x309   : > { %1809 = vrcp.f32 %v1118_v7  ;;  %v1291_v33 = vunpack.c.l.b16 %v1243_v28 }
 0x30a   : > { %v1089_v15 = vmul.f32 1.442695, %v1038_v39  ;;  %v1122_v52 = vpop.xlane.xlu2 %1121  ;;  %1811 = vpow2.f32 %v1085_v6 }
 0x30b   : > { %v2522_v17 = vpop.eup %1807 }
 0x30c   : > { %979 = vmax.xlane.f32.xlu2 %v2520_v11  ;;  %1151 = vadd.xlane.f32.xlu0 %v2522_v17  ;;  %1813 = vpow2.f32 %v1089_v15 }
 0x30f   : > { %v1810_v16 = vpop.eup %1809  ;;  %v996_v34 = vpop.xlane.xlu1 %995 }
 0x310   : > { %v1120_v10 = vpop.xlane.xlu0 %1119  ;;  %v1212_v18 = vmul.f32 %v1810_v16, %v2443_v13  ;;  %v2529_v32 = vpop.eup %1811  ;;  %v1039_v40 = vsub.f32 %v2451_v25, %v996_v34 }
 0x311   : > { %1815 = vrcp.f32 %v1120_v10 }
 0x312   : > { %v1244_v36 = vpack.c.bf16 %v1212_v18, %v1212_v18  ;;  %v2531_v38 = vpop.eup %1813  ;;  %1817 = vrcp.f32 %v1122_v52  ;;  %v2536_v13 = vpop.xlane.xlu2 %1123  ;;  %v1091_v47 = vmul.f32 1.442695, %v1039_v40 }
 0x313   : > { %1819 = vpow2.f32 %v1061_v30  ;;  %v1028_v30 = vsub.f32 %v2417_v60, %v2509_v61 }
 0x314   : > { %1153 = vadd.xlane.f32.xlu2 %v2531_v38  ;;  %1149 = vadd.xlane.f32.xlu0 %v2529_v32  ;;  %v1292_v37 = vunpack.c.l.b16 %v1244_v36  ;;  %1821 = vpow2.f32 %v1091_v47 }
 0x315   : > { %1823 = vpow2.f32 %v1065_v29  ;;  %v1069_v40 = vmul.f32 1.442695, %v1028_v30 }
 0x316   : > { %v1307_v42 = vpack.c.b16 %v1292_v37, %v1291_v33  ;;  %v647_v33 = vld [vmem:[%s2774_s2 + $0x78] sm:$0xff] }
 0x317   : > { %v1816_v14 = vpop.eup %1815 }
 0x318   : > { %1355 = vmatmul.bf16.vlgmr.msrb.gmra.mxu2 %v1307_v42  ;;  %v1818_v46 = vpop.eup %1817  ;;  %v1213_v58 = vmul.f32 %v1816_v14, %v2453_v27  ;;  %v976_v56 = vpop.xlane.xlu0 %975 }
 0x319   : > { %v2541_v53 = vpop.eup %1819  ;;  %v1214_v25 = vmul.f32 %v1818_v46, %v2447_v24  ;;  %v952_v42 = vpop.f32.mrf.mxu3  ;;  %v1027_v46 = vsub.f32 %v2407_v57, %v2504_v55 }
 0x31a   : > { %v1245_v59 = vpack.c.bf16 %v1213_v58, %v1213_v58  ;;  %v998_v62 = vpop.xlane.xlu2 %997  ;;  %v2553_v2 = vpop.eup %1821 }
 0x31b   : > { %v1246_v27 = vpack.c.bf16 %v1214_v25, %v1214_v25  ;;  %v1040_v24 = vsub.f32 %v2467_v26, %v998_v62  ;;  %v2561_v52 = vpop.eup %1823  ;;  %v797_v26 = vpop.f32.mrf.mxu2  ;;  %v1067_v9 = vmul.f32 1.442695, %v1027_v46 }
 0x31c   : > { %1011 = vmax.xlane.f32.xlu2 %v2538_v48  ;;  %1125 = vadd.xlane.f32.xlu0 %v2541_v53  ;;  %v1293_v1 = vunpack.c.l.b16 %v1245_v59 }
 0x31d   : > { %v1294_v3 = vunpack.c.l.b16 %v1246_v27  ;;  %v1093_v7 = vmul.f32 1.442695, %v1040_v24 }
 0x31f   : > { %v1308_v4 = vpack.c.b16 %v1294_v3, %v1293_v1 }
 0x320   : > { %v1000_v22 = vpop.xlane.xlu0 %999 }
 0x321   : > { %v1041_v34 = vsub.f32 %v2471_v35, %v1000_v22  ;;  %v2588_v35 = vadd.f32 %v952_v42, %v647_v33 }
 0x323   : > { %v799_v37 = vpop.f32.mrf.mxu2  ;;  %v1095_v14 = vmul.f32 1.442695, %v1041_v34 }
 0x324   : > { %1155 = vadd.xlane.f32.xlu2 %v2553_v2  ;;  %981 = vmax.xlane.f32.xlu0 %v2551_v63  ;;  %v2586_v61 = vadd.f32 %v799_v37, %v647_v33 }
 0x327   : > { %v1445_v5 = vpop.permute.xlu1 %1444  ;;  %v1002_v6 = vpop.xlane.xlu2 %1001 }
 0x328   : > { %v1042_v39 = vsub.f32 %v2475_v21, %v1002_v6  ;;  %1475 = vmatpush.bf16.msrb.mxu3 %v1445_v5  ;;  %1360 = vmatmul.bf16.gmra.mxu2 %v1308_v4  ;;  %v646_v21 = vld [vmem:[%s2774_s2 + $0x70] sm:$0xff] }
 0x329   : > { %v2570_v10 = vadd.f32 %v797_v26, %v646_v21  ;;  %v2584_v44 = vadd.f32 %v950_v19, %v646_v21 }
 0x32a   : > { %v1097_v15 = vmul.f32 1.442695, %v1042_v39 }
 0x32c   : > { %1825 = vpow2.f32 %v1097_v15  ;;  %1129 = vadd.xlane.f32.xlu2 %v2561_v52  ;;  %1013 = vmax.xlane.f32.xlu0 %v2559_v8 }
 0x32d   : > { %1827 = vpow2.f32 %v1093_v7 }
 0x32e   : > { %1829 = vpow2.f32 %v1069_v40 }
 0x32f   : > { %v1004_v18 = vpop.xlane.xlu2 %1003  ;;  %1831 = vpow2.f32 %v1095_v14 }
 0x330   : > { %v1043_v36 = vsub.f32 %v2481_v31, %v1004_v18  ;;  %v1029_v31 = vsub.f32 %v2463_v12, %v976_v56 }
 0x332   : > { %v2568_v16 = vpop.eup %1825  ;;  %v1099_v60 = vmul.f32 1.442695, %v1043_v36  ;;  %v1071_v58 = vmul.f32 1.442695, %v1029_v31 }
 0x333   : > { %v2572_v28 = vpop.eup %1827  ;;  %1161 = vadd.xlane.f32.xlu1 %v2568_v16 }
 0x334   : > { %983 = vmax.xlane.f32.xlu2 %v2570_v10  ;;  %1157 = vadd.xlane.f32.xlu0 %v2572_v28  ;;  %1833 = vpow2.f32 %v1099_v60  ;;  %v2596_v25 = vpop.eup %1829 }
 0x335   : > { %v2598_v59 = vpop.eup %1831  ;;  %1835 = vpow2.f32 %v1071_v58 }
 0x336   : > { %1837 = vpow2.f32 %v1067_v9 }
 0x337   : > { %v1006_v47 = vpop.xlane.xlu0 %1005 }
 0x338   : > { %v1044_v57 = vsub.f32 %v2485_v41, %v1006_v47 }
 0x33a   : > { %v2600_v50 = vpop.eup %1833  ;;  %v1101_v20 = vmul.f32 1.442695, %v1044_v57 }
 0x33b   : > { %1015 = vmax.xlane.f32.xlu1 %v2584_v44  ;;  %v2607_v62 = vpop.eup %1835 }
 0x33c   : > { %1017 = vmax.xlane.f32.xlu2 %v2588_v35  ;;  %985 = vmax.xlane.f32.xlu0 %v2586_v61  ;;  %v2609_v1 = vpop.eup %1837 }
 0x33f   : > { %v1008_v27 = vpop.xlane.xlu2 %1007 }
 0x340   : > { %v1045_v54 = vsub.f32 %v2488_v43, %v1008_v27 }
 0x342   : > { %v1103_v3 = vmul.f32 1.442695, %v1045_v54 }
 0x343   : > { %1133 = vadd.xlane.f32.xlu1 %v2596_v25 }
 0x344   : > { %1163 = vadd.xlane.f32.xlu2 %v2600_v50  ;;  %1159 = vadd.xlane.f32.xlu0 %v2598_v59 }
 0x347   : > { %v1010_v12 = vpop.xlane.xlu0 %1009 }
 0x348   : > { %v1046_v55 = vsub.f32 %v2494_v45, %v1010_v12 }
 0x34a   : > { %v1105_v29 = vmul.f32 1.442695, %v1046_v55 }
 0x34b   : > { %1135 = vadd.xlane.f32.xlu1 %v2607_v62 }
 0x34c   : > { %1839 = vpow2.f32 %v1105_v29  ;;  %1131 = vadd.xlane.f32.xlu0 %v2609_v1 }
 0x34d   : > { %1841 = vpow2.f32 %v1101_v20 }
 0x34e   : > { %1843 = vpow2.f32 %v1103_v3 }
 0x352   : > { %v2614_v41 = vpop.eup %1839  ;;  %v978_v24 = vpop.xlane.xlu1 %977 }
 0x353   : > { %v2616_v45 = vpop.eup %1841  ;;  %v1030_v56 = vsub.f32 %v2498_v49, %v978_v24  ;;  %1169 = vadd.xlane.f32.xlu1 %v2614_v41 }
 0x354   : > { %1165 = vadd.xlane.f32.xlu0 %v2616_v45  ;;  %v2621_v5 = vpop.eup %1843 }
 0x355   : > { %v1073_v4 = vmul.f32 1.442695, %v1030_v56 }
 0x357   : > { %1845 = vpow2.f32 %v1073_v4 }
 0x35a   : > { %v1128_v46 = vpop.xlane.xlu1 %1127 }
 0x35c   : > { %1167 = vadd.xlane.f32.xlu0 %v2621_v5 }
 0x35d   : > { %v2624_v43 = vpop.eup %1845 }
 0x35e   : > { %1137 = vadd.xlane.f32.xlu2 %v2624_v43 }
 0x377   : > { %v1148_v6 = vpop.xlane.xlu2 %1147 }
 0x378   : > { %1847 = vrcp.f32 %v1148_v6 }
 0x37e   : > { %v1848_v21 = vpop.eup %1847 }
 0x37f   : > { %v980_v39 = vpop.xlane.xlu2 %979  ;;  %v1152_v7 = vpop.xlane.xlu0 %1151  ;;  %v1227_v18 = vmul.f32 %v1848_v21, %v2512_v0 }
 0x380   : > { %v1031_v49 = vsub.f32 %v2520_v11, %v980_v39 }
 0x381   : > { %v1259_v40 = vpack.c.bf16 %v1227_v18, %v1227_v18 }
 0x382   : > { %v1075_v15 = vmul.f32 1.442695, %v1031_v49 }
 0x383   : > { %v1412_v0 = vunpack.c.l.b16 %v1259_v40 }
 0x384   : > { %1849 = vpow2.f32 %v1075_v15 }
 0x387   : > { %v1154_v26 = vpop.xlane.xlu2 %1153  ;;  %v1150_v19 = vpop.xlane.xlu0 %1149 }
 0x388   : > { %1851 = vrcp.f32 %v1150_v19 }
 0x389   : > { %1853 = vrcp.f32 %v2536_v13 }
 0x38a   : > { %v2628_v22 = vpop.eup %1849 }
 0x38b   : > { %1139 = vadd.xlane.f32.xlu2 %v2628_v22 }
 0x38e   : > { %v1852_v30 = vpop.eup %1851 }
 0x38f   : > { %v1012_v11 = vpop.xlane.xlu2 %1011  ;;  %v1126_v34 = vpop.xlane.xlu0 %1125  ;;  %v1228_v37 = vmul.f32 %v1852_v30, %v2529_v32 }
 0x390   : > { %v1854_v36 = vpop.eup %1853  ;;  %v1047_v33 = vsub.f32 %v2538_v48, %v1012_v11  ;;  %1855 = vrcp.f32 %v1126_v34 }
 0x391   : > { %1857 = vrcp.f32 %v1154_v26  ;;  %v1260_v13 = vpack.c.bf16 %v1228_v37, %v1228_v37  ;;  %v1215_v14 = vmul.f32 %v1854_v36, %v2457_v23 }
 0x392   : > { %v1107_v42 = vmul.f32 1.442695, %v1047_v33  ;;  %1859 = vrcp.f32 %v1152_v7 }
 0x393   : > { %v1413_v60 = vunpack.c.l.b16 %v1260_v13  ;;  %v1247_v57 = vpack.c.bf16 %v1215_v14, %v1215_v14 }
 0x394   : > { %1861 = vpow2.f32 %v1107_v42 }
 0x395   : > { %v1428_v47 = vpack.c.b16 %v1413_v60, %v1412_v0  ;;  %1863 = vrcp.f32 %v1128_v46 }
 0x396   : > { %v1856_v31 = vpop.eup %1855 }
 0x397   : > { %v1858_v58 = vpop.eup %1857  ;;  %v1156_v48 = vpop.xlane.xlu2 %1155  ;;  %v1216_v32 = vmul.f32 %v1856_v31, %v2541_v53  ;;  %1476 = vmatmul.bf16.vlgmr.msrb.gmra.mxu3 %v1428_v47  ;;  %v1295_v53 = vunpack.c.l.b16 %v1247_v57 }
 0x398   : > { %v982_v9 = vpop.xlane.xlu0 %981  ;;  %v1860_v55 = vpop.eup %1859  ;;  %v1230_v29 = vmul.f32 %v1858_v58, %v2531_v38 }
 0x399   : > { %v1032_v12 = vsub.f32 %v2551_v63, %v982_v9  ;;  %v1248_v23 = vpack.c.bf16 %v1216_v32, %v1216_v32  ;;  %v1229_v63 = vmul.f32 %v1860_v55, %v2522_v17 }
 0x39a   : > { %v2645_v20 = vpop.eup %1861  ;;  %v1262_v56 = vpack.c.bf16 %v1230_v29, %v1230_v29 }
 0x39b   : > { %v1077_v27 = vmul.f32 1.442695, %v1032_v12  ;;  %v1356_v54 = vpop.f32.mrf.mxu2  ;;  %1171 = vadd.xlane.f32.xlu1 %v2645_v20  ;;  %v1296_v3 = vunpack.c.l.b16 %v1248_v23  ;;  %v1864_v39 = vpop.eup %1863  ;;  %v1261_v7 = vpack.c.bf16 %v1229_v63, %v1229_v63 }
 0x39c   : > { %1517 = vst.msk [vmem:[%s2643_s6] sm:$0xff] %vm704_vm0, %v1356_v54  ;;  %v1415_v26 = vunpack.c.l.b16 %v1262_v56  ;;  %v1217_v17 = vmul.f32 %v1864_v39, %v2501_v51 }
 0x39d   : > { %1865 = vpow2.f32 %v1077_v27  ;;  %v1309_v24 = vpack.c.b16 %v1296_v3, %v1295_v53  ;;  %v1414_v21 = vunpack.c.l.b16 %v1261_v7 }
 0x39e   : > { %v1249_v33 = vpack.c.bf16 %v1217_v17, %v1217_v17 }
 0x39f   : > { %v1130_v4 = vpop.xlane.xlu2 %1129  ;;  %1365 = vmatmul.bf16.gmra.mxu2 %v1309_v24  ;;  %v1429_v11 = vpack.c.b16 %v1415_v26, %v1414_v21 }
 0x3a0   : > { %v1014_v6 = vpop.xlane.xlu0 %1013  ;;  %1867 = vrcp.f32 %v1130_v4  ;;  %v1297_v0 = vunpack.c.l.b16 %v1249_v33 }
 0x3a1   : > { %v1048_v38 = vsub.f32 %v2559_v8, %v1014_v6  ;;  %1869 = vrcp.f32 %v1156_v48 }
 0x3a3   : > { %v2653_v49 = vpop.eup %1865  ;;  %v1109_v15 = vmul.f32 1.442695, %v1048_v38  ;;  %v1358_v19 = vpop.f32.mrf.mxu2 }
 0x3a4   : > { %1141 = vadd.xlane.f32.xlu0 %v2653_v49  ;;  %1518 = vst.msk [vmem:[%s2643_s6 + $0x8] sm:$0xff] %vm704_vm0, %v1358_v19 }
 0x3a5   : > { %1871 = vpow2.f32 %v1109_v15 }
 0x3a6   : > { %v1868_v18 = vpop.eup %1867  ;;  %v1162_v30 = vpop.xlane.xlu1 %1161 }
 0x3a7   : > { %v984_v34 = vpop.xlane.xlu2 %983  ;;  %v1218_v36 = vmul.f32 %v1868_v18, %v2561_v52  ;;  %v1870_v37 = vpop.eup %1869  ;;  %1481 = vmatmul.bf16.gmra.mxu3 %v1429_v11 }
 0x3a8   : > { %v1158_v8 = vpop.xlane.xlu0 %1157  ;;  %v1033_v40 = vsub.f32 %v2570_v10, %v984_v34  ;;  %v1231_v31 = vmul.f32 %v1870_v37, %v2553_v2 }
 0x3a9   : > { %1873 = vrcp.f32 %v1158_v8  ;;  %v1250_v42 = vpack.c.bf16 %v1218_v36, %v1218_v36 }
 0x3aa   : > { %v1079_v13 = vmul.f32 1.442695, %v1033_v40  ;;  %v1263_v32 = vpack.c.bf16 %v1231_v31, %v1231_v31 }
 0x3ab   : > { %v2661_v51 = vpop.eup %1871  ;;  %v1361_v14 = vpop.f32.mrf.mxu2  ;;  %v1298_v60 = vunpack.c.l.b16 %v1250_v42 }
 0x3ac   : > { %1173 = vadd.xlane.f32.xlu2 %v2661_v51  ;;  %1875 = vpow2.f32 %v1079_v13  ;;  %1519 = vst.msk [vmem:[%s2643_s6 + $0x10] sm:$0xff] %vm704_vm0, %v1361_v14  ;;  %v1416_v54 = vunpack.c.l.b16 %v1263_v32 }
 0x3ad   : > { %v1310_v52 = vpack.c.b16 %v1298_v60, %v1297_v0  ;;  %1877 = vrcp.f32 %v1162_v30 }
 0x3ae   : > { %v1016_v47 = vpop.xlane.xlu1 %1015 }
 0x3af   : > { %v1874_v46 = vpop.eup %1873  ;;  %v1049_v10 = vsub.f32 %v2584_v44, %v1016_v47  ;;  %v1018_v58 = vpop.xlane.xlu2 %1017  ;;  %1370 = vmatmul.bf16.gmra.mxu2 %v1310_v52 }
 0x3b0   : > { %v986_v48 = vpop.xlane.xlu0 %985  ;;  %v1232_v9 = vmul.f32 %v1874_v46, %v2572_v28  ;;  %v1050_v57 = vsub.f32 %v2588_v35, %v1018_v58 }
 0x3b1   : > { %v1034_v12 = vsub.f32 %v2586_v61, %v986_v48  ;;  %v1111_v2 = vmul.f32 1.442695, %v1049_v10 }
 0x3b2   : > { %v1264_v55 = vpack.c.bf16 %v1232_v9, %v1232_v9  ;;  %v2671_v23 = vpop.eup %1875  ;;  %v1113_v27 = vmul.f32 1.442695, %v1050_v57 }
 0x3b3   : > { %v1081_v29 = vmul.f32 1.442695, %v1034_v12  ;;  %1879 = vpow2.f32 %v1111_v2  ;;  %v1363_v44 = vpop.f32.mrf.mxu2  ;;  %1143 = vadd.xlane.f32.xlu0 %v2671_v23  ;;  %v1878_v3 = vpop.eup %1877 }
 0x3b4   : > { %v1417_v53 = vunpack.c.l.b16 %v1264_v55  ;;  %1881 = vpow2.f32 %v1113_v27  ;;  %1520 = vst.msk [vmem:[%s2643_s6 + $0x18] sm:$0xff] %vm704_vm0, %v1363_v44  ;;  %v1234_v4 = vmul.f32 %v1878_v3, %v2568_v16 }
 0x3b5   : > { %1883 = vpow2.f32 %v1081_v29 }
 0x3b6   : > { %v1430_v28 = vpack.c.b16 %v1417_v53, %v1416_v54  ;;  %v1134_v35 = vpop.xlane.xlu1 %1133  ;;  %v1266_v26 = vpack.c.bf16 %v1234_v4, %v1234_v4 }
 0x3b7   : > { %v1164_v39 = vpop.xlane.xlu2 %1163 }
 0x3b8   : > { %v1160_v61 = vpop.xlane.xlu0 %1159  ;;  %1486 = vmatmul.bf16.gmra.mxu3 %v1430_v28  ;;  %v1419_v18 = vunpack.c.l.b16 %v1266_v26 }
 0x3b9   : > { %v2676_v63 = vpop.eup %1879  ;;  %1885 = vrcp.f32 %v1160_v61 }
 0x3ba   : > { %v2678_v24 = vpop.eup %1881  ;;  %1887 = vrcp.f32 %v1134_v35  ;;  %1175 = vadd.xlane.f32.xlu2 %v2676_v63 }
 0x3bb   : > { %v2681_v56 = vpop.eup %1883  ;;  %1177 = vadd.xlane.f32.xlu0 %v2678_v24 }
 0x3bc   : > { %1145 = vadd.xlane.f32.xlu1 %v2681_v56 }
 0x3be   : > { %v1136_v11 = vpop.xlane.xlu1 %1135 }
 0x3bf   : > { %v1886_v6 = vpop.eup %1885 }
 0x3c0   : > { %v1132_v38 = vpop.xlane.xlu0 %1131  ;;  %v1888_v7 = vpop.eup %1887  ;;  %v1233_v15 = vmul.f32 %v1886_v6, %v2598_v59 }
 0x3c1   : > { %1889 = vrcp.f32 %v1132_v38  ;;  %v1220_v17 = vmul.f32 %v1888_v7, %v2596_v25 }
 0x3c2   : > { %1891 = vrcp.f32 %v1164_v39  ;;  %v1265_v19 = vpack.c.bf16 %v1233_v15, %v1233_v15 }
 0x3c3   : > { %v1252_v36 = vpack.c.bf16 %v1220_v17, %v1220_v17 }
 0x3c4   : > { %v1418_v21 = vunpack.c.l.b16 %v1265_v19 }
 0x3c5   : > { %v1300_v59 = vunpack.c.l.b16 %v1252_v36 }
 0x3c6   : > { %v1431_v34 = vpack.c.b16 %v1419_v18, %v1418_v21  ;;  %v1170_v31 = vpop.xlane.xlu1 %1169 }
 0x3c7   : > { %v1890_v30 = vpop.eup %1889 }
 0x3c8   : > { %v1166_v8 = vpop.xlane.xlu0 %1165  ;;  %v1219_v16 = vmul.f32 %v1890_v30, %v2609_v1  ;;  %v1892_v33 = vpop.eup %1891  ;;  %1491 = vmatmul.bf16.gmra.mxu3 %v1431_v34 }
 0x3c9   : > { %1893 = vrcp.f32 %v1166_v8  ;;  %v1235_v42 = vmul.f32 %v1892_v33, %v2600_v50 }
 0x3ca   : > { %v1251_v37 = vpack.c.bf16 %v1219_v16, %v1219_v16  ;;  %1895 = vrcp.f32 %v1136_v11 }
 0x3cb   : > { %v1267_v60 = vpack.c.bf16 %v1235_v42, %v1235_v42 }
 0x3cc   : > { %v1299_v40 = vunpack.c.l.b16 %v1251_v37 }
 0x3cd   : > { %v1420_v47 = vunpack.c.l.b16 %v1267_v60 }
 0x3ce   : > { %v1311_v13 = vpack.c.b16 %v1300_v59, %v1299_v40 }
 0x3cf   : > { %v1894_v25 = vpop.eup %1893 }
 0x3d0   : > { %1375 = vmatmul.bf16.gmra.mxu2 %v1311_v13  ;;  %v1168_v14 = vpop.xlane.xlu0 %1167  ;;  %v1236_v0 = vmul.f32 %v1894_v25, %v2616_v45  ;;  %v1896_v46 = vpop.eup %1895 }
 0x3d1   : > { %1897 = vrcp.f32 %v1168_v14  ;;  %v1138_v1 = vpop.xlane.xlu2 %1137  ;;  %v1221_v50 = vmul.f32 %v1896_v46, %v2607_v62 }
 0x3d2   : > { %v1268_v52 = vpack.c.bf16 %v1236_v0, %v1236_v0  ;;  %1899 = vrcp.f32 %v1138_v1 }
 0x3d3   : > { %1901 = vrcp.f32 %v1170_v31  ;;  %v1253_v45 = vpack.c.bf16 %v1221_v50, %v1221_v50 }
 0x3d4   : > { %v1421_v10 = vunpack.c.l.b16 %v1268_v52 }
 0x3d5   : > { %v1301_v27 = vunpack.c.l.b16 %v1253_v45 }
 0x3d6   : > { %v1432_v58 = vpack.c.b16 %v1421_v10, %v1420_v47 }
 0x3d7   : > { %v1898_v48 = vpop.eup %1897 }
 0x3d8   : > { %v1900_v9 = vpop.eup %1899  ;;  %1496 = vmatmul.bf16.gmra.mxu3 %v1432_v58  ;;  %v1237_v12 = vmul.f32 %v1898_v48, %v2621_v5 }
 0x3d9   : > { %v1902_v32 = vpop.eup %1901  ;;  %v1222_v57 = vmul.f32 %v1900_v9, %v2624_v43 }
 0x3da   : > { %v1238_v55 = vmul.f32 %v1902_v32, %v2614_v41  ;;  %v1269_v44 = vpack.c.bf16 %v1237_v12, %v1237_v12 }
 0x3db   : > { %v1254_v2 = vpack.c.bf16 %v1222_v57, %v1222_v57 }
 0x3dc   : > { %v1270_v53 = vpack.c.bf16 %v1238_v55, %v1238_v55  ;;  %v1422_v62 = vunpack.c.l.b16 %v1269_v44 }
 0x3dd   : > { %v1302_v29 = vunpack.c.l.b16 %v1254_v2 }
 0x3de   : > { %v1423_v28 = vunpack.c.l.b16 %v1270_v53 }
 0x3df   : > { %v1312_v54 = vpack.c.b16 %v1302_v29, %v1301_v27 }
 0x3e0   : > { %v1433_v35 = vpack.c.b16 %v1423_v28, %v1422_v62 }
 0x3e1   : > { %1380 = vmatmul.bf16.gmra.mxu2 %v1312_v54 }
 0x3e8   : > { %1501 = vmatmul.bf16.gmra.mxu3 %v1433_v35 }
 0x3fe   : > { %v1140_v61 = vpop.xlane.xlu2 %1139 }
 0x3ff   : > { %1903 = vrcp.f32 %v1140_v61 }
 0x405   : > { %v1904_v4 = vpop.eup %1903 }
 0x406   : > { %v1223_v41 = vmul.f32 %v1904_v4, %v2628_v22 }
 0x408   : > { %v1255_v7 = vpack.c.bf16 %v1223_v41, %v1223_v41 }
 0x40a   : > { %v1303_v17 = vunpack.c.l.b16 %v1255_v7 }
 0x40e   : > { %v1172_v43 = vpop.xlane.xlu1 %1171 }
 0x417   : > { %v1142_v3 = vpop.xlane.xlu0 %1141 }
 0x418   : > { %1905 = vrcp.f32 %v1142_v3 }
 0x419   : > { %1907 = vrcp.f32 %v1172_v43 }
 0x41a   : > { %v1477_v5 = vpop.f32.mrf.mxu3 }
 0x41b   : > { %1533 = vst.msk [vmem:[%s2643_s6 + $0x80] sm:$0xff] %vm704_vm0, %v1477_v5 }
 0x41e   : > { %v1906_v6 = vpop.eup %1905 }
 0x41f   : > { %v1174_v39 = vpop.xlane.xlu2 %1173  ;;  %v1224_v38 = vmul.f32 %v1906_v6, %v2653_v49  ;;  %v1908_v15 = vpop.eup %1907 }
 0x420   : > { %1909 = vrcp.f32 %v1174_v39  ;;  %v1239_v18 = vmul.f32 %v1908_v15, %v2645_v20 }
 0x421   : > { %v1256_v26 = vpack.c.bf16 %v1224_v38, %v1224_v38 }
 0x422   : > { %v1366_v19 = vpop.f32.mrf.mxu2  ;;  %v1479_v22 = vpop.f32.mrf.mxu3  ;;  %v1271_v8 = vpack.c.bf16 %v1239_v18, %v1239_v18 }
 0x423   : > { %v1304_v21 = vunpack.c.l.b16 %v1256_v26  ;;  %1521 = vst.msk [vmem:[%s2643_s6 + $0x20] sm:$0xff] %vm704_vm0, %v1366_v19 }
 0x424   : > { %1534 = vst.msk [vmem:[%s2643_s6 + $0x88] sm:$0xff] %vm704_vm0, %v1479_v22  ;;  %v1424_v33 = vunpack.c.l.b16 %v1271_v8 }
 0x425   : > { %v1313_v30 = vpack.c.b16 %v1304_v21, %v1303_v17 }
 0x426   : > { %v1910_v11 = vpop.eup %1909  ;;  %v1144_v49 = vpop.xlane.xlu0 %1143 }
 0x427   : > { %1385 = vmatmul.bf16.gmra.mxu2 %v1313_v30  ;;  %v1240_v34 = vmul.f32 %v1910_v11, %v2661_v51  ;;  %1911 = vrcp.f32 %v1144_v49 }
 0x429   : > { %v1272_v16 = vpack.c.bf16 %v1240_v34, %v1240_v34 }
 0x42a   : > { %v1368_v36 = vpop.f32.mrf.mxu2  ;;  %v1482_v20 = vpop.f32.mrf.mxu3 }
 0x42b   : > { %v1425_v37 = vunpack.c.l.b16 %v1272_v16  ;;  %1522 = vst.msk [vmem:[%s2643_s6 + $0x28] sm:$0xff] %vm704_vm0, %v1368_v36 }
 0x42c   : > { %1535 = vst.msk [vmem:[%s2643_s6 + $0x90] sm:$0xff] %vm704_vm0, %v1482_v20 }
 0x42d   : > { %v1434_v40 = vpack.c.b16 %v1425_v37, %v1424_v33  ;;  %v1176_v59 = vpop.xlane.xlu2 %1175  ;;  %v1912_v51 = vpop.eup %1911 }
 0x42e   : > { %1913 = vrcp.f32 %v1176_v59  ;;  %v1178_v42 = vpop.xlane.xlu0 %1177  ;;  %v1225_v0 = vmul.f32 %v1912_v51, %v2671_v23 }
 0x42f   : > { %1506 = vmatmul.bf16.gmra.mxu3 %v1434_v40  ;;  %v1146_v13 = vpop.xlane.xlu1 %1145  ;;  %1915 = vrcp.f32 %v1178_v42 }
 0x430   : > { %1917 = vrcp.f32 %v1146_v13  ;;  %v1257_v10 = vpack.c.bf16 %v1225_v0, %v1225_v0 }
 0x432   : > { %v1371_v25 = vpop.f32.mrf.mxu2  ;;  %v1484_v14 = vpop.f32.mrf.mxu3 }
 0x433   : > { %1523 = vst.msk [vmem:[%s2643_s6 + $0x30] sm:$0xff] %vm704_vm0, %v1371_v25 }
 0x434   : > { %v1914_v60 = vpop.eup %1913  ;;  %1536 = vst.msk [vmem:[%s2643_s6 + $0x98] sm:$0xff] %vm704_vm0, %v1484_v14 }
 0x435   : > { %v1916_v31 = vpop.eup %1915  ;;  %v1241_v1 = vmul.f32 %v1914_v60, %v2676_v63  ;;  %v1305_v63 = vunpack.c.l.b16 %v1257_v10 }
 0x436   : > { %v1918_v52 = vpop.eup %1917  ;;  %v1242_v46 = vmul.f32 %v1916_v31, %v2678_v24 }
 0x437   : > { %v1226_v47 = vmul.f32 %v1918_v52, %v2681_v56  ;;  %v1273_v58 = vpack.c.bf16 %v1241_v1, %v1241_v1 }
 0x438   : > { %v1274_v50 = vpack.c.bf16 %v1242_v46, %v1242_v46 }
 0x439   : > { %v1258_v48 = vpack.c.bf16 %v1226_v47, %v1226_v47  ;;  %v1426_v23 = vunpack.c.l.b16 %v1273_v58 }
 0x43a   : > { %v1373_v9 = vpop.f32.mrf.mxu2  ;;  %v1427_v32 = vunpack.c.l.b16 %v1274_v50 }
 0x43b   : > { %1524 = vst.msk [vmem:[%s2643_s6 + $0x38] sm:$0xff] %vm704_vm0, %v1373_v9  ;;  %v1487_v57 = vpop.f32.mrf.mxu3  ;;  %v1306_v45 = vunpack.c.l.b16 %v1258_v48 }
 0x43c   : > { %1537 = vst.msk [vmem:[%s2643_s6 + $0xa0] sm:$0xff] %vm704_vm0, %v1487_v57  ;;  %v1435_v24 = vpack.c.b16 %v1427_v32, %v1426_v23 }
 0x43d   : > { %v1314_v56 = vpack.c.b16 %v1306_v45, %v1305_v63 }
 0x43f   : > { %1511 = vmatmul.bf16.gmra.mxu3 %v1435_v24  ;;  %1390 = vmatmul.bf16.gmra.mxu2 %v1314_v56 }
 0x443   : > { %v1489_v12 = vpop.f32.mrf.mxu3 }
 0x444   : > { %1538 = vst.msk [vmem:[%s2643_s6 + $0xa8] sm:$0xff] %vm704_vm0, %v1489_v12 }
 0x44b   : > { %v1492_v2 = vpop.f32.mrf.mxu3 }
 0x44c   : > { %1539 = vst.msk [vmem:[%s2643_s6 + $0xb0] sm:$0xff] %vm704_vm0, %v1492_v2 }
 0x453   : > { %v1376_v55 = vpop.f32.mrf.mxu2  ;;  %v1494_v27 = vpop.f32.mrf.mxu3 }
 0x454   : > { %1525 = vst.msk [vmem:[%s2643_s6 + $0x40] sm:$0xff] %vm704_vm0, %v1376_v55 }
 0x455   : > { %1540 = vst.msk [vmem:[%s2643_s6 + $0xb8] sm:$0xff] %vm704_vm0, %v1494_v27 }
 0x45b   : > { %v1378_v29 = vpop.f32.mrf.mxu2  ;;  %v1497_v44 = vpop.f32.mrf.mxu3 }
 0x45c   : > { %1526 = vst.msk [vmem:[%s2643_s6 + $0x48] sm:$0xff] %vm704_vm0, %v1378_v29 }
 0x45d   : > { %1541 = vst.msk [vmem:[%s2643_s6 + $0xc0] sm:$0xff] %vm704_vm0, %v1497_v44 }
 0x463   : > { %v1499_v54 = vpop.f32.mrf.mxu3 }
 0x464   : > { %1542 = vst.msk [vmem:[%s2643_s6 + $0xc8] sm:$0xff] %vm704_vm0, %v1499_v54  ;;  %v1381_v53 = vpop.f32.mrf.mxu2 }
 0x465   : > { %1527 = vst.msk [vmem:[%s2643_s6 + $0x50] sm:$0xff] %vm704_vm0, %v1381_v53 }
 0x46b   : > { %v1502_v62 = vpop.f32.mrf.mxu3 }
 0x46c   : > { %1543 = vst.msk [vmem:[%s2643_s6 + $0xd0] sm:$0xff] %vm704_vm0, %v1502_v62  ;;  %v1383_v28 = vpop.f32.mrf.mxu2 }
 0x46d   : > { %1528 = vst.msk [vmem:[%s2643_s6 + $0x58] sm:$0xff] %vm704_vm0, %v1383_v28 }
 0x473   : > { %v1504_v35 = vpop.f32.mrf.mxu3 }
 0x474   : > { %1544 = vst.msk [vmem:[%s2643_s6 + $0xd8] sm:$0xff] %vm704_vm0, %v1504_v35 }
 0x4aa   : > { %v1386_v61 = vpop.f32.mrf.mxu2 }
 0x4ab   : > { %1529 = vst.msk [vmem:[%s2643_s6 + $0x60] sm:$0xff] %vm704_vm0, %v1386_v61 }
 0x4b2   : > { %v1388_v43 = vpop.f32.mrf.mxu2  ;;  %v1507_v3 = vpop.f32.mrf.mxu3 }
 0x4b3   : > { %1530 = vst.msk [vmem:[%s2643_s6 + $0x68] sm:$0xff] %vm704_vm0, %v1388_v43 }
 0x4b4   : > { %1545 = vst.msk [vmem:[%s2643_s6 + $0xe0] sm:$0xff] %vm704_vm0, %v1507_v3 }
 0x4ba   : > { %v1509_v4 = vpop.f32.mrf.mxu3 }
 0x4bb   : > { %1546 = vst.msk [vmem:[%s2643_s6 + $0xe8] sm:$0xff] %vm704_vm0, %v1509_v4 }
 0x4c2   : > { %v1512_v41 = vpop.f32.mrf.mxu3  ;;  %v1391_v5 = vpop.f32.mrf.mxu2 }
 0x4c3   : > { %1531 = vst.msk [vmem:[%s2643_s6 + $0x70] sm:$0xff] %vm704_vm0, %v1391_v5 }
 0x4c4   : > { %1547 = vst.msk [vmem:[%s2643_s6 + $0xf0] sm:$0xff] %vm704_vm0, %v1512_v41 }
 0x4ca   : > { %v1514_v6 = vpop.f32.mrf.mxu3  ;;  %v1393_v39 = vpop.f32.mrf.mxu2 }
 0x4cb   : > { %1532 = vst.msk [vmem:[%s2643_s6 + $0x78] sm:$0xff] %vm704_vm0, %v1393_v39 }
 0x4cc   : > { %1548 = vst.msk [vmem:[%s2643_s6 + $0xf8] sm:$0xff] %vm704_vm0, %v1514_v6 }
 0x4cd PF: > { %p13_p7 = scmp.ge.s32.totalorder %s2029_s17, 4   ;;  %s2779_s12 = smov %s1975_s13 }
 0x4ce   : > { %s2780_s13 = smov %s1979_s14  ;;  %s2781_s14 = smov %s2039_s20 }
 0x4cf   : > { %s2782_s15 = smov %s2029_s17  ;;  %15 = sbr.rel (!%p13_p7) target bundleno = 3 (0x3), region = 72 }
 0x4d4   :  { %1573 = vsyncpa [#allocation3], 1 }
 0x4d5   :  { %1575 = vsyncpa [#allocation3 + $0x1], 1 }

</bundles_post_ra>
